<compile_context>
chip_gen: v7x
topology: tpu7x:2x2x1
jax: 0.10.0
libtpu: 0.0.40
codegen_flags: <defaults>
</compile_context>

<pallas_src>
import jax
import jax.numpy as jnp
import numpy as np
from jax import lax
from jax.experimental import pallas as pl
from jax.experimental.pallas import tpu as pltpu


def _subpixel_conv_kernel(x_ref, w_ref, b_ref, a_ref, o_ref, xt_ref):
    """One (batch, row-tile) grid step.

    x_ref : (1, H, W, Cin)      bf16 NHWC input, resident per batch element
    w_ref : (9*Cin, Cout)       bf16 im2col-packed weights, columns in (i, j, c) order
    b_ref : (1, Cout)           f32 bias (same column order)
    a_ref : (1,)                f32 PReLU alpha (SMEM)
    o_ref : (1, r, TH, W, r*C)  f32 output block; dim 1 is the vertical shuffle phase i
    xt_ref: (TH+2, W+2, Cin)    bf16 scratch: zero-padded, halo'd input row tile
    """
    H, W, Cin = x_ref.shape[1], x_ref.shape[2], x_ref.shape[3]
    Cout = w_ref.shape[1]
    r, TH = o_ref.shape[1], o_ref.shape[2]
    rC = Cout // r                       # = r * C

    h_idx = pl.program_id(1)
    n_h = pl.num_programs(1)
    row0 = h_idx * TH

    # ---- in-kernel 'same' padding: build the halo'd (TH+2, W+2, Cin) tile -------
    xt_ref[...] = jnp.zeros_like(xt_ref)
    xt_ref[1:TH + 1, 1:W + 1, :] = x_ref[0, pl.ds(row0, TH), :, :]

    @pl.when(h_idx > 0)
    def _():  # top halo row
        xt_ref[0:1, 1:W + 1, :] = x_ref[0, pl.ds(row0 - 1, 1), :, :]

    @pl.when(h_idx < n_h - 1)
    def _():  # bottom halo row
        xt_ref[TH + 1:TH + 2, 1:W + 1, :] = x_ref[0, pl.ds(row0 + TH, 1), :, :]

    # ---- im2col: 9 shifted views concatenated along lanes -> single MXU matmul ---
    taps = []
    for kh in range(3):
        for kw in range(3):
            taps.append(xt_ref[kh:kh + TH, kw:kw + W, :])      # (TH, W, Cin) bf16
    cols = jnp.concatenate(taps, axis=-1)                      # (TH, W, 9*Cin)
    cols = cols.reshape(TH * W, 9 * Cin)

    acc = jnp.dot(cols, w_ref[...],                            # K = 9*Cin
                  preferred_element_type=jnp.float32)          # (TH*W, Cout) f32

    # ---- epilogue in f32: bias + PReLU (single shared alpha) ---------------------
    y = acc + b_ref[...].astype(jnp.float32)
    alpha = a_ref[0]
    y = jnp.where(y >= 0, y, alpha * y)
    y = y.astype(o_ref.dtype)

    # ---- pixel shuffle at store time: columns are (i, j, c)-ordered, so phase i
    #      is a contiguous column block; each store is a cheap leading-dim reshape.
    for i in range(r):
        o_ref[0, i] = y[:, i * rC:(i + 1) * rC].reshape(TH, W, rC)


def _auto_block_h(h, max_rows=32):
    """Largest divisor of h that is <= max_rows (keeps VMEM bounded on v7x)."""
    if h <= max_rows:
        return h
    for th in range(max_rows, 0, -1):
        if h % th == 0:
            return th
    return h


def _pack_params(weight, bias, scale_factor):
    """Repack torch conv params for the kernel.

    weight: (Cout, Cin, 3, 3), Cout index o = c*r*r + i*r + j  (c-major, torch order)
    -> rows (kh, kw, ci) for im2col, columns re-ordered to (i, j, c) so the matmul
       output already groups the r*r pixel-shuffle phases contiguously.
    """
    Cout, Cin, _, _ = weight.shape
    r = scale_factor
    C = Cout // (r * r)
    w = jnp.transpose(weight, (2, 3, 1, 0))                    # (3, 3, Cin, Cout)
    w = w.reshape(3, 3, Cin, C, r, r)                          # (..., c, i, j)
    w = jnp.transpose(w, (0, 1, 2, 4, 5, 3))                   # (..., i, j, c)
    w = w.reshape(9 * Cin, Cout)
    b = bias.reshape(C, r, r)                                  # (c, i, j)
    b = jnp.transpose(b, (1, 2, 0)).reshape(1, Cout)           # (i, j, c)
    return w, b


def _subpixel_conv_packed(x_nhwc, weight, bias, alpha, scale_factor, block_h):
    """Runs the Pallas kernel; returns the 'packed' output (B, r, H, W, r, C) f32."""
    B, H, W, Cin = x_nhwc.shape
    r = scale_factor
    Cout = Cin * r * r
    assert weight.shape == (Cout, Cin, 3, 3), weight.shape
    C = Cin
    rC = r * C

    if block_h is None:
        block_h = _auto_block_h(H)
    assert H % block_h == 0, (H, block_h)
    n_h = H // block_h

    w2, b2 = _pack_params(weight, bias, r)
    x_bf = x_nhwc.astype(jnp.bfloat16)                 # bf16 MXU operands
    w_bf = w2.astype(jnp.bfloat16)
    b_f32 = b2.astype(jnp.float32)
    a_f32 = jnp.asarray(alpha, jnp.float32).reshape((1,))

    out = pl.pallas_call(
        _subpixel_conv_kernel,
        out_shape=jax.ShapeDtypeStruct((B, r, H, W, rC), jnp.float32),
        grid_spec=pltpu.PrefetchScalarGridSpec(
            num_scalar_prefetch=0,
            grid=(B, n_h),
            in_specs=[
                # input resident per batch element (index constant along the h axis)
                pl.BlockSpec((1, H, W, Cin), lambda b, h: (b, 0, 0, 0)),
                # weights / bias resident across the whole grid
                pl.BlockSpec((9 * Cin, Cout), lambda b, h: (0, 0)),
                pl.BlockSpec((1, Cout), lambda b, h: (0, 0)),
                # scalar PReLU alpha via the scalar path
                pl.BlockSpec(memory_space=pltpu.MemorySpace.SMEM),
            ],
            out_specs=pl.BlockSpec((1, r, block_h, W, rC),
                                   lambda b, h: (b, 0, h, 0, 0)),
            scratch_shapes=[
                pltpu.VMEM((block_h + 2, W + 2, Cin), jnp.bfloat16),
            ],
        ),
        compiler_params=pltpu.CompilerParams(
            dimension_semantics=("parallel", "parallel"),
            vmem_limit_bytes=48 * 1024 * 1024,
        ),
    )(x_bf, w_bf, b_f32, a_f32)

    # packed element [b, i, h, w, j*C + c]  ->  split last dim (free metadata)
    return out.reshape(B, r, H, W, r, C)


def subpixel_conv_nhwc(x_nhwc, weight, bias, alpha, scale_factor=2, block_h=None):
    """NHWC-boundary variant: (B, H, W, C) -> (B, H*r, W*r, C)."""
    B, H, W, C = x_nhwc.shape
    r = scale_factor
    o = _subpixel_conv_packed(x_nhwc, weight, bias, alpha, r, block_h)
    o = jnp.transpose(o, (0, 2, 1, 3, 4, 5))               # (b, h, i, w, j, c)
    return o.reshape(B, H * r, W * r, C)


def subpixel_conv(x_nchw, weight, bias, alpha, scale_factor=2, block_h=None):
    """Torch-compatible SubPixelConv forward: (B, C, H, W) -> (B, C, H*r, W*r)."""
    B, C, H, W = x_nchw.shape
    r = scale_factor
    x_nhwc = jnp.transpose(x_nchw, (0, 2, 3, 1))            # boundary glue (NCHW API)
    o = _subpixel_conv_packed(x_nhwc, weight, bias, alpha, r, block_h)
    o = jnp.transpose(o, (0, 5, 2, 1, 3, 4))                # (b, c, h, i, w, j)
    return o.reshape(B, C, H * r, W * r)


def _reference(x_nchw, weight, bias, alpha, scale_factor=2, matmul_dtype=jnp.float32):
    """Pure-JAX reference mirroring torch conv3x3 -> pixel_shuffle -> PReLU."""
    B, C, H, W = x_nchw.shape
    r = scale_factor
    y = lax.conv_general_dilated(
        x_nchw.astype(matmul_dtype), weight.astype(matmul_dtype),
        window_strides=(1, 1), padding=((1, 1), (1, 1)),
        dimension_numbers=("NCHW", "OIHW", "NCHW"),
        preferred_element_type=jnp.float32)
    y = y + bias.reshape(1, -1, 1, 1).astype(jnp.float32)
    Cc = weight.shape[0] // (r * r)
    y = y.reshape(B, Cc, r, r, H, W)
    y = jnp.transpose(y, (0, 1, 4, 2, 5, 3))
    y = y.reshape(B, Cc, H * r, W * r)
    return jnp.where(y >= 0, y, alpha * y)


if __name__ == "__main__":
    num_features = 4
    scale = 2
    B, C, H, W = 2, num_features, 16, 16
    Cout = C * scale * scale

    key = jax.random.PRNGKey(0)
    kx, kwt, kb = jax.random.split(key, 3)
    x = jax.random.normal(kx, (B, C, H, W), jnp.float32)
    weight = jax.random.normal(kwt, (Cout, C, 3, 3), jnp.float32) * 0.1
    bias = jax.random.normal(kb, (Cout,), jnp.float32) * 0.1
    alpha = jnp.float32(0.25)  # torch nn.PReLU default init

    # block_h=8 -> two row tiles per image: exercises the halo / boundary paths.
    out = subpixel_conv(x, weight, bias, alpha, scale, block_h=8)
    out = jax.block_until_ready(out)
    assert out.shape == (B, C, H * scale, W * scale), out.shape

    # Tight check against a reference that uses the same bf16 MXU operands.
    ref_bf = jax.block_until_ready(
        _reference(x, weight, bias, alpha, scale, matmul_dtype=jnp.bfloat16))
    np.testing.assert_allclose(np.asarray(out), np.asarray(ref_bf),
                               rtol=5e-3, atol=5e-3)

    # Loose check against exact f32 torch semantics (gap = bf16 input quantization).
    ref_f32 = jax.block_until_ready(
        _reference(x, weight, bias, alpha, scale, matmul_dtype=jnp.float32))
    np.testing.assert_allclose(np.asarray(out), np.asarray(ref_f32),
                               rtol=5e-2, atol=5e-2)

    print("KERNEL_OK")
</pallas_src>

<mosaic_0001>
module attributes {stable_mosaic.version = 11 : i64} {
  func.func @_subpixel_conv_kernel(%arg0: i32, %arg1: i32, %arg2: memref<1x16x16x4xbf16, #tpu.memory_space<vmem>>, %arg3: memref<36x16xbf16, #tpu.memory_space<vmem>>, %arg4: memref<1x16xf32, #tpu.memory_space<vmem>>, %arg5: memref<1xf32, #tpu.memory_space<smem>>, %arg6: memref<1x2x8x16x8xf32, #tpu.memory_space<vmem>>, %arg7: memref<10x18x4xbf16, #tpu.memory_space<vmem>>) attributes {dimension_semantics = [#tpu.dimension_semantics<parallel>, #tpu.dimension_semantics<parallel>], iteration_bounds = array<i64: 2, 2>, scalar_prefetch = 0 : i64, scratch_operands = 1 : i64, tpu.core_type = #tpu.core_type<tc>, window_params = [{transform_indices = @transform_0, window_bounds = array<i64: 1, 16, 16, 4>}, {pipeline_mode = #tpu.pipeline_mode<synchronous>, transform_indices = @transform_1, window_bounds = array<i64: 36, 16>}, {pipeline_mode = #tpu.pipeline_mode<synchronous>, transform_indices = @transform_2, window_bounds = array<i64: 1, 16>}, {transform_indices = @transform_3, window_bounds = array<i64: 1>}, {transform_indices = @transform_4, window_bounds = array<i64: 1, 2, 8, 16, 8>}]} {
    %c8_i32 = arith.constant 8 : i32
    %0 = arith.muli %arg1, %c8_i32 : i32
    %cst = arith.constant 0.000000e+00 : bf16
    %1 = vector.broadcast %cst : bf16 to vector<10x18x4xbf16>
    %c0 = arith.constant 0 : index
    %c0_0 = arith.constant 0 : index
    %c0_1 = arith.constant 0 : index
    %2 = vector.load %arg7[%c0, %c0_0, %c0_1] : memref<10x18x4xbf16, #tpu.memory_space<vmem>>, vector<10x18x4xbf16>
    tpu.vector_store %arg7[%c0, %c0_0, %c0_1], %1 {strides = array<i32>} : memref<10x18x4xbf16, #tpu.memory_space<vmem>>, vector<10x18x4xbf16>,
    %c0_2 = arith.constant 0 : index
    %3 = arith.index_cast %0 : i32 to index
    %c0_3 = arith.constant 0 : index
    %c0_4 = arith.constant 0 : index
    %4 = vector.load %arg2[%c0_2, %3, %c0_3, %c0_4] : memref<1x16x16x4xbf16, #tpu.memory_space<vmem>>, vector<1x8x16x4xbf16>
    %5 = vector.shape_cast %4 : vector<1x8x16x4xbf16> to vector<8x16x4xbf16>
    %c1 = arith.constant 1 : index
    %c1_5 = arith.constant 1 : index
    %c0_6 = arith.constant 0 : index
    %6 = vector.load %arg7[%c1, %c1_5, %c0_6] : memref<10x18x4xbf16, #tpu.memory_space<vmem>>, vector<8x16x4xbf16>
    tpu.vector_store %arg7[%c1, %c1_5, %c0_6], %5 {strides = array<i32>} : memref<10x18x4xbf16, #tpu.memory_space<vmem>>, vector<8x16x4xbf16>,
    %c0_i32 = arith.constant 0 : i32
    %7 = arith.cmpi sgt, %arg1, %c0_i32 : i32
    %8 = arith.extui %7 : i1 to i32
    %c0_i32_7 = arith.constant 0 : i32
    %9 = arith.cmpi ne, %8, %c0_i32_7 : i32
    scf.if %9 {
      %c1_i32_52 = arith.constant 1 : i32
      %45 = arith.subi %0, %c1_i32_52 : i32
      %c0_53 = arith.constant 0 : index
      %46 = arith.index_cast %45 : i32 to index
      %c0_54 = arith.constant 0 : index
      %c0_55 = arith.constant 0 : index
      %47 = vector.load %arg2[%c0_53, %46, %c0_54, %c0_55] : memref<1x16x16x4xbf16, #tpu.memory_space<vmem>>, vector<1x1x16x4xbf16>
      %48 = vector.shape_cast %47 : vector<1x1x16x4xbf16> to vector<1x16x4xbf16>
      %c0_56 = arith.constant 0 : index
      %c1_57 = arith.constant 1 : index
      %c0_58 = arith.constant 0 : index
      %49 = vector.load %arg7[%c0_56, %c1_57, %c0_58] : memref<10x18x4xbf16, #tpu.memory_space<vmem>>, vector<1x16x4xbf16>
      tpu.vector_store %arg7[%c0_56, %c1_57, %c0_58], %48 {strides = array<i32>} : memref<10x18x4xbf16, #tpu.memory_space<vmem>>, vector<1x16x4xbf16>,
    } else {
    }
    %c1_i32 = arith.constant 1 : i32
    %10 = arith.cmpi slt, %arg1, %c1_i32 : i32
    %11 = arith.extui %10 : i1 to i32
    %c0_i32_8 = arith.constant 0 : i32
    %12 = arith.cmpi ne, %11, %c0_i32_8 : i32
    scf.if %12 {
      %c8_i32_52 = arith.constant 8 : i32
      %45 = arith.addi %0, %c8_i32_52 : i32
      %c0_53 = arith.constant 0 : index
      %46 = arith.index_cast %45 : i32 to index
      %c0_54 = arith.constant 0 : index
      %c0_55 = arith.constant 0 : index
      %47 = vector.load %arg2[%c0_53, %46, %c0_54, %c0_55] : memref<1x16x16x4xbf16, #tpu.memory_space<vmem>>, vector<1x1x16x4xbf16>
      %48 = vector.shape_cast %47 : vector<1x1x16x4xbf16> to vector<1x16x4xbf16>
      %c9 = arith.constant 9 : index
      %c1_56 = arith.constant 1 : index
      %c0_57 = arith.constant 0 : index
      %49 = vector.load %arg7[%c9, %c1_56, %c0_57] : memref<10x18x4xbf16, #tpu.memory_space<vmem>>, vector<1x16x4xbf16>
      tpu.vector_store %arg7[%c9, %c1_56, %c0_57], %48 {strides = array<i32>} : memref<10x18x4xbf16, #tpu.memory_space<vmem>>, vector<1x16x4xbf16>,
    } else {
    }
    %c0_9 = arith.constant 0 : index
    %c0_10 = arith.constant 0 : index
    %c0_11 = arith.constant 0 : index
    %13 = vector.load %arg7[%c0_9, %c0_10, %c0_11] : memref<10x18x4xbf16, #tpu.memory_space<vmem>>, vector<8x16x4xbf16>
    %c0_12 = arith.constant 0 : index
    %c1_13 = arith.constant 1 : index
    %c0_14 = arith.constant 0 : index
    %14 = vector.load %arg7[%c0_12, %c1_13, %c0_14] : memref<10x18x4xbf16, #tpu.memory_space<vmem>>, vector<8x16x4xbf16>
    %c0_15 = arith.constant 0 : index
    %c2 = arith.constant 2 : index
    %c0_16 = arith.constant 0 : index
    %15 = vector.load %arg7[%c0_15, %c2, %c0_16] : memref<10x18x4xbf16, #tpu.memory_space<vmem>>, vector<8x16x4xbf16>
    %c1_17 = arith.constant 1 : index
    %c0_18 = arith.constant 0 : index
    %c0_19 = arith.constant 0 : index
    %16 = vector.load %arg7[%c1_17, %c0_18, %c0_19] : memref<10x18x4xbf16, #tpu.memory_space<vmem>>, vector<8x16x4xbf16>
    %c1_20 = arith.constant 1 : index
    %c1_21 = arith.constant 1 : index
    %c0_22 = arith.constant 0 : index
    %17 = vector.load %arg7[%c1_20, %c1_21, %c0_22] : memref<10x18x4xbf16, #tpu.memory_space<vmem>>, vector<8x16x4xbf16>
    %c1_23 = arith.constant 1 : index
    %c2_24 = arith.constant 2 : index
    %c0_25 = arith.constant 0 : index
    %18 = vector.load %arg7[%c1_23, %c2_24, %c0_25] : memref<10x18x4xbf16, #tpu.memory_space<vmem>>, vector<8x16x4xbf16>
    %c2_26 = arith.constant 2 : index
    %c0_27 = arith.constant 0 : index
    %c0_28 = arith.constant 0 : index
    %19 = vector.load %arg7[%c2_26, %c0_27, %c0_28] : memref<10x18x4xbf16, #tpu.memory_space<vmem>>, vector<8x16x4xbf16>
    %c2_29 = arith.constant 2 : index
    %c1_30 = arith.constant 1 : index
    %c0_31 = arith.constant 0 : index
    %20 = vector.load %arg7[%c2_29, %c1_30, %c0_31] : memref<10x18x4xbf16, #tpu.memory_space<vmem>>, vector<8x16x4xbf16>
    %c2_32 = arith.constant 2 : index
    %c2_33 = arith.constant 2 : index
    %c0_34 = arith.constant 0 : index
    %21 = vector.load %arg7[%c2_32, %c2_33, %c0_34] : memref<10x18x4xbf16, #tpu.memory_space<vmem>>, vector<8x16x4xbf16>
    %22 = tpu.concatenate %13, %14, %15, %16, %17, %18, %19, %20, %21 in 2 : vector<8x16x4xbf16>, vector<8x16x4xbf16>, vector<8x16x4xbf16>, vector<8x16x4xbf16>, vector<8x16x4xbf16>, vector<8x16x4xbf16>, vector<8x16x4xbf16>, vector<8x16x4xbf16>, vector<8x16x4xbf16> -> vector<8x16x36xbf16>
    %23 = vector.shape_cast %22 : vector<8x16x36xbf16> to vector<128x36xbf16>
    %c0_35 = arith.constant 0 : index
    %c0_36 = arith.constant 0 : index
    %24 = vector.load %arg3[%c0_35, %c0_36] : memref<36x16xbf16, #tpu.memory_space<vmem>>, vector<36x16xbf16>
    %cst_37 = arith.constant dense<0.000000e+00> : vector<128x16xf32>
    %25 = tpu.matmul %23, %24, %cst_37 {dimension_numbers = #tpu.dot_dimension_numbers<[1], [0], [0], [1], [0, 0, 1, 1], [], []>} : vector<128x36xbf16>, vector<36x16xbf16>, vector<128x16xf32> -> vector<128x16xf32>
    %c0_38 = arith.constant 0 : index
    %c0_39 = arith.constant 0 : index
    %26 = vector.load %arg4[%c0_38, %c0_39] : memref<1x16xf32, #tpu.memory_space<vmem>>, vector<1x16xf32>
    %27 = vector.broadcast %26 : vector<1x16xf32> to vector<128x16xf32>
    %28 = arith.addf %25, %27 : vector<128x16xf32>
    %c0_40 = arith.constant 0 : index
    %29 = memref.load %arg5[%c0_40] : memref<1xf32, #tpu.memory_space<smem>>
    %cst_41 = arith.constant 0.000000e+00 : f32
    %30 = vector.broadcast %cst_41 : f32 to vector<128x16xf32>
    %31 = arith.cmpf oge, %28, %30 : vector<128x16xf32>
    %32 = vector.broadcast %29 : f32 to vector<128x16xf32>
    %33 = arith.mulf %32, %28 : vector<128x16xf32>
    %34 = arith.select %31, %28, %33 : vector<128x16xi1>, vector<128x16xf32>
    %35 = vector.extract_strided_slice %34 {offsets = [0, 0], sizes = [128, 8], strides = [1, 1]} : vector<128x16xf32> to vector<128x8xf32>
    %36 = vector.shape_cast %35 : vector<128x8xf32> to vector<8x16x8xf32>
    %c0_42 = arith.constant 0 : index
    %c0_43 = arith.constant 0 : index
    %c0_44 = arith.constant 0 : index
    %c0_45 = arith.constant 0 : index
    %c0_46 = arith.constant 0 : index
    %37 = vector.load %arg6[%c0_42, %c0_43, %c0_44, %c0_45, %c0_46] : memref<1x2x8x16x8xf32, #tpu.memory_space<vmem>>, vector<1x1x8x16x8xf32>
    %38 = vector.shape_cast %37 : vector<1x1x8x16x8xf32> to vector<8x16x8xf32>
    %39 = vector.shape_cast %36 : vector<8x16x8xf32> to vector<1x1x8x16x8xf32>
    tpu.vector_store %arg6[%c0_42, %c0_43, %c0_44, %c0_45, %c0_46], %39 {strides = array<i32>} : memref<1x2x8x16x8xf32, #tpu.memory_space<vmem>>, vector<1x1x8x16x8xf32>,
    %40 = vector.extract_strided_slice %34 {offsets = [0, 8], sizes = [128, 8], strides = [1, 1]} : vector<128x16xf32> to vector<128x8xf32>
    %41 = vector.shape_cast %40 : vector<128x8xf32> to vector<8x16x8xf32>
    %c0_47 = arith.constant 0 : index
    %c1_48 = arith.constant 1 : index
    %c0_49 = arith.constant 0 : index
    %c0_50 = arith.constant 0 : index
    %c0_51 = arith.constant 0 : index
    %42 = vector.load %arg6[%c0_47, %c1_48, %c0_49, %c0_50, %c0_51] : memref<1x2x8x16x8xf32, #tpu.memory_space<vmem>>, vector<1x1x8x16x8xf32>
    %43 = vector.shape_cast %42 : vector<1x1x8x16x8xf32> to vector<8x16x8xf32>
    %44 = vector.shape_cast %41 : vector<8x16x8xf32> to vector<1x1x8x16x8xf32>
    tpu.vector_store %arg6[%c0_47, %c1_48, %c0_49, %c0_50, %c0_51], %44 {strides = array<i32>} : memref<1x2x8x16x8xf32, #tpu.memory_space<vmem>>, vector<1x1x8x16x8xf32>,
    return
  }
  func.func @transform_0(%arg0: i32, %arg1: i32) -> (i32, i32, i32, i32) {
    %c0_i32 = arith.constant 0 : i32
    %c0_i32_0 = arith.constant 0 : i32
    %c0_i32_1 = arith.constant 0 : i32
    %c0_i32_2 = arith.constant 0 : i32
    return %arg0, %c0_i32, %c0_i32_0, %c0_i32_1 : i32, i32, i32, i32
  }
  func.func @transform_1(%arg0: i32, %arg1: i32) -> (i32, i32) {
    %c0_i32 = arith.constant 0 : i32
    %c0_i32_0 = arith.constant 0 : i32
    %c0_i32_1 = arith.constant 0 : i32
    return %c0_i32, %c0_i32_0 : i32, i32
  }
  func.func @transform_2(%arg0: i32, %arg1: i32) -> (i32, i32) {
    %c0_i32 = arith.constant 0 : i32
    %c0_i32_0 = arith.constant 0 : i32
    %c0_i32_1 = arith.constant 0 : i32
    return %c0_i32, %c0_i32_0 : i32, i32
  }
  func.func @transform_3(%arg0: i32, %arg1: i32) -> i32 {
    %c0_i32 = arith.constant 0 : i32
    %c0_i32_0 = arith.constant 0 : i32
    return %c0_i32 : i32
  }
  func.func @transform_4(%arg0: i32, %arg1: i32) -> (i32, i32, i32, i32, i32) {
    %c0_i32 = arith.constant 0 : i32
    %c0_i32_0 = arith.constant 0 : i32
    %c0_i32_1 = arith.constant 0 : i32
    %c0_i32_2 = arith.constant 0 : i32
    return %arg0, %c0_i32, %arg1, %c0_i32_0, %c0_i32_1 : i32, i32, i32, i32, i32
  }
}

</mosaic_0001>

<bundles_post_ra>
// kernel: tpu_custom_call.1
= control target key start
LH: loop header
LB: loop body
LE: loop exit
PB: predicated region body
PF: predicated region fallthrough
CT: control target
= control target key end

     0   :  { %s3299_s0 = inlined_call_operand.vmem [shape: bf16[2,16,16,4], index: 0, kind: input, shape index: {}]   ;;  %s3300_s1 = inlined_call_operand.vmem [shape: bf16[36,16], index: 1, kind: input, shape index: {}]   ;;  %s3301_s2 = inlined_call_operand.vmem [shape: f32[1,16], index: 2, kind: input, shape index: {}]   ;;  %s3302_s3 = inlined_call_operand.<no memory space> [shape: f32[1], index: 3, kind: input, shape index: {}]   ;;  %s3303_s4 = inlined_call_operand.vmem [shape: f32[2,2,16,16,8], index: 4, kind: output, shape index: {}]  }
   0x1   :  { %9 = sst [smem:[#allocation3]] %s3302_s3 }
   0x2   :  { %s2491_s17 = smov 0   ;;  %s2493_s18 = smov 0  }
   0x3   :  { %s2495_s19 = smov 0   ;;  %s2497_s20 = smov 0  }
   0x4   :  { %s2499_s21 = smov 0   ;;  %s2501_s22 = smov 0  }
   0x5   :  { %s2503_s23 = smov 0  }
   0x6 LB: > { %s24_s3 = sadd.s32 1, %s2443_s21  ;;  %s27_s24 = sadd.s32 1, %s2447_s22  ;;  %s2451_s23 = sphi %s2503_s23, %s15_s23   ;;  %s2447_s22 = sphi %s2501_s22, %s3316_s22   ;;  %s2443_s21 = sphi %s2499_s21, %s3315_s21   ;;  %s2439_s20 = sphi %s2497_s20, %s3314_s20   ;;  %s2435_s19 = sphi %s2495_s19, %s3313_s19   ;;  %s2431_s18 = sphi %s2493_s18, %s3312_s18   ;;  %s2427_s17 = sphi %s2491_s17, %s3311_s17  }
   0x7   : > { %p25_p0 = scmp.ge.s32.totalorder %s24_s3, 2  ;;  %s2082_s25 = sadd.s32 4294967295, %s2451_s23  }
   0x8   : > { %p135_p1 = scmp.ne.s32.totalorder %s2431_s18, %s2427_s17  ;;  %p136_p2 = scmp.eq.s32.totalorder %s2082_s25, 3 }
   0x9   : > { %s3318_s3 = smov (%p25_p0, %s24_s3), 0  ;;  %s3320_s24 = smov (!%p25_p0, %s27_s24), %s2447_s22 }
   0xa   : > { %s121_s26 = ssub.s32 %s2443_s21, %s3318_s3  ;;  %p29_p3 = scmp.ge.s32.totalorder %s3320_s24, 2 }
   0xb   : > { %p2086_p4 = scmp.ge.s32.totalorder %s2451_s23, 1  ;;  %p2537_p5 = por %p136_p2, %p135_p1 }
   0xc   : > { %p177_p6 = scmp.lt.s32.totalorder %s2451_s23, 5  ;;  %s3322_s24 = smov (%p29_p3, %s3320_s24), 0 }
   0xd   : > { %s120_s28 = ssub.s32 %s2447_s22, %s3322_s24  ;;  %s125_s30 = sadd.s32 1, %s2431_s18 }
   0xe   : > { %p178_p7 = pnand %p2086_p4, %p177_p6  ;;  %s122_s29 = sor.u32 %s121_s26, %s120_s28 }
   0xf   : > { %p123_p8 = scmp.eq.s32.totalorder %s122_s29, 0  ;;  %vm210_vm0 = vcmask (!%p178_p7), 27648   ;;  %vm213_vm1 = vcmask (!%p178_p7), 24576   ;;  %s199_s6 = sand.u32 (!%p178_p7), 1, %s2427_s17   ;;  %v2453_v0 = vmov (!%p178_p7), 0  }
  0x10   : > { %181 = sbr.rel (%p178_p7) target bundleno = 684 (0x2ac), region = 36  ;;  %s2090_s7 = sshll.u32 (!%p178_p7), %s2435_s19, 3  ;;  %215 = vst.msk [vmem:[#allocation2 + $0xc] sm:$0xf] (!%p178_p7), %vm210_vm0, %v2453_v0  ;;  %211 = vst.msk [vmem:[#allocation2] sm:$0xf] (!%p178_p7), %vm210_vm0, %v2453_v0 }
  0x11   : > { %s2548_s5 = scalar_select %p123_p8, %s2431_s18, %s125_s30  }
  0x12   : > { %212 = vst.msk [vmem:[#allocation2 + $0x4] sm:$0xf] (!%p178_p7), %vm210_vm0, %v2453_v0  ;;  %216 = vst.msk [vmem:[#allocation2 + $0x10] sm:$0xf] (!%p178_p7), %vm210_vm0, %v2453_v0  ;;  %s2584_s8 = sshll.u32 (!%p178_p7), %s199_s6, 8  ;;  %p202_p9 = scmp.lt.s32.totalorder (!%p178_p7), %s2439_s20, 1 }
  0x13   : > { %218 = vst.msk [vmem:[#allocation2 + $0x18] sm:$0xf] (!%p178_p7), %vm210_vm0, %v2453_v0  ;;  %219 = vst.msk [vmem:[#allocation2 + $0x1c] sm:$0xf] (!%p178_p7), %vm210_vm0, %v2453_v0  ;;  %s2211_s10 = sshll.u32 (!%p178_p7), %s2435_s19, 6  ;;  %s2686_s16 = scalar_lea.vmem (!%p178_p7), [#allocation4], %s2584_s8 }
  0x14   : > { %221 = vst.msk [vmem:[#allocation2 + $0x24] sm:$0xf] (!%p178_p7), %vm210_vm0, %v2453_v0  ;;  %222 = vst.msk [vmem:[#allocation2 + $0x28] sm:$0xf] (!%p178_p7), %vm210_vm0, %v2453_v0  ;;  %vm426_vm2 = vsmask.f32 (!%p178_p7), 7938 }
  0x15   : > { %224 = vst.msk [vmem:[#allocation2 + $0x30] sm:$0xf] (!%p178_p7), %vm210_vm0, %v2453_v0  ;;  %225 = vst.msk [vmem:[#allocation2 + $0x34] sm:$0xf] (!%p178_p7), %vm210_vm0, %v2453_v0  ;;  %vm261_vm3 = vsmask.f32 (!%p178_p7), 256 }
  0x16   : > { %227 = vst.msk [vmem:[#allocation2 + $0x3c] sm:$0xf] (!%p178_p7), %vm210_vm0, %v2453_v0  ;;  %228 = vst.msk [vmem:[#allocation2 + $0x40] sm:$0xf] (!%p178_p7), %vm210_vm0, %v2453_v0  ;;  %vm262_vm4 = vsmask.f32 (!%p178_p7), 4368 }
  0x17   : > { %230 = vst.msk [vmem:[#allocation2 + $0x48] sm:$0xf] %vm210_vm0, %v2453_v0  ;;  %231 = vst.msk [vmem:[#allocation2 + $0x4c] sm:$0xf] %vm210_vm0, %v2453_v0  ;;  %s203_s9 = scalar_select %p202_p9, %s2439_s20, 1 }
  0x18   : > { %233 = vst.msk [vmem:[#allocation2 + $0x54] sm:$0xf] %vm210_vm0, %v2453_v0  ;;  %234 = vst.msk [vmem:[#allocation2 + $0x58] sm:$0xf] %vm210_vm0, %v2453_v0  ;;  %v428_v8 = vld [vmem:[#allocation2 + $0xc] sm:$0xf] }
  0x19   : > { %236 = vst.msk [vmem:[#allocation2 + $0x60] sm:$0xf] %vm210_vm0, %v2453_v0  ;;  %237 = vst.msk [vmem:[#allocation2 + $0x64] sm:$0xf] %vm210_vm0, %v2453_v0  ;;  %s2209_s11 = sshll.u32 %s203_s9, 7  ;;  %p2093_p10 = scmp.le.s32.totalorder %s2435_s19, 0 }
  0x1a   : > { %239 = vst.msk [vmem:[#allocation2 + $0x6c] sm:$0xf] %vm210_vm0, %v2453_v0  ;;  %240 = vst.msk [vmem:[#allocation2 + $0x70] sm:$0xf] %vm210_vm0, %v2453_v0  ;;  %s2592_s14 = scalar_lea.vmem %s3299_s0, %s2209_s11  ;;  %v437_v34 = vld [vmem:[#allocation2 + $0x18] sm:$0xf] }
  0x1b   : > { %217 = vst.msk [vmem:[#allocation2 + $0x14] sm:$0x1] %vm213_vm1, %v2453_v0  ;;  %214 = vst.msk [vmem:[#allocation2 + $0x8] sm:$0x1] %vm213_vm1, %v2453_v0  ;;  %s2595_s15 = scalar_lea.vmem %s2592_s14, %s2211_s10  ;;  %v444_v50 = vld [vmem:[#allocation2 + $0x24] sm:$0xf] }
  0x1c   : > { %220 = vst.msk [vmem:[#allocation2 + $0x20] sm:$0x1] %vm213_vm1, %v2453_v0  ;;  %223 = vst.msk [vmem:[#allocation2 + $0x2c] sm:$0x1] %vm213_vm1, %v2453_v0  ;;  %v245_v1 = vld [vmem:[%s2595_s15] sm:$0xf] }
  0x1d   : > { %226 = vst.msk [vmem:[#allocation2 + $0x38] sm:$0x1] %vm213_vm1, %v2453_v0  ;;  %229 = vst.msk [vmem:[#allocation2 + $0x44] sm:$0x1] %vm213_vm1, %v2453_v0  ;;  %v246_v2 = vld [vmem:[%s2595_s15 + $0x4] sm:$0xf] }
  0x1e   : > { %232 = vst.msk [vmem:[#allocation2 + $0x50] sm:$0x1] %vm213_vm1, %v2453_v0  ;;  %235 = vst.msk [vmem:[#allocation2 + $0x5c] sm:$0x1] %vm213_vm1, %v2453_v0  ;;  %v265_v3 = vshrl.u32 %v245_v1, 16  ;;  %v268_v4 = vshll.u32 %v245_v1, 16 }
  0x1f   : > { %238 = vst.msk [vmem:[#allocation2 + $0x68] sm:$0x1] %vm213_vm1, %v2453_v0  ;;  %241 = vst.msk [vmem:[#allocation2 + $0x74] sm:$0x1] %vm213_vm1, %v2453_v0  ;;  %v273_v6 = vshrl.u32 %v246_v2, 16  ;;  %v276_v7 = vshll.u32 %v246_v2, 16 }
  0x20   : > { %vm2600_vm5 = vmand %vm210_vm0, %vm426_vm2  ;;  %v247_v9 = vld [vmem:[%s2595_s15 + $0x8] sm:$0xf]  ;;  %v248_v10 = vld [vmem:[%s2595_s15 + $0xc] sm:$0xf]  ;;  %v267_v11 = vrot.slane %v265_v3, 7  ;;  %s2094_s17 = sadd.s32 (!%p2093_p10), 4294967295, %s2090_s7 }
  0x21   : > { %vm2607_vm6 = vmor %vm261_vm3, %vm262_vm4  ;;  %v275_v13 = vrot.slane %v273_v6, 7  ;;  %v282_v15 = vshrl.u32 %v247_v9, 16  ;;  %v285_v17 = vshll.u32 %v247_v9, 16  ;;  %v290_v18 = vshrl.u32 %v248_v10, 16  ;;  %v249_v20 = vld [vmem:[%s2595_s15 + $0x10] sm:$0xf] }
  0x22   : > { %v434_v14 = vld [vmem:[#allocation2 + $0x14] sm:$0x1]  ;;  %vm2613_vm7 = vmand %vm213_vm1, %vm261_vm3  ;;  %v293_v19 = vshll.u32 %v248_v10, 16  ;;  %v270_v21 = vor.u32 %v268_v4, %v267_v11  ;;  %v271_v22 = vrot.slane %v267_v11, 4  ;;  %v299_v28 = vshrl.u32 %v249_v20, 16  ;;  %s2212_s25 = sshll.u32 (!%p2093_p10), %s2094_s17, 3 }
  0x23   : > { %v278_v23 = vor.u32 %v276_v7, %v275_v13  ;;  %v280_v24 = vrot.slane %v275_v13, 4  ;;  %v250_v25 = vld [vmem:[%s2595_s15 + $0x14] sm:$0xf]  ;;  %v284_v26 = vrot.slane %v282_v15, 7  ;;  %v292_v27 = vrot.slane %v290_v18, 7  ;;  %s493_s26 = scalar_lea.vmem (!%p2093_p10), %s2592_s14, %s2212_s25 }
  0x24   : > { %v302_v29 = vshll.u32 %v249_v20, 16  ;;  %v251_v30 = vld [vmem:[%s2595_s15 + $0x18] sm:$0xf]  ;;  %v429_v31 = vsel %vm2600_vm5, %v270_v21, %v428_v8  ;;  %v441_v35 = vld [vmem:[#allocation2 + $0x20] sm:$0x1]  ;;  %v307_v36 = vshrl.u32 %v250_v25, 16 }
  0x25   : > { %v279_v32 = vsel %vm2607_vm6, %v271_v22, %v278_v23  ;;  %v435_v33 = vsel %vm2613_vm7, %v280_v24, %v434_v14  ;;  %430 = vst [vmem:[#allocation2 + $0xc] sm:$0xf] %v429_v31  ;;  %v287_v37 = vor.u32 %v285_v17, %v284_v26  ;;  %v288_v38 = vrot.slane %v284_v26, 4  ;;  %v252_v41 = vld [vmem:[%s2595_s15 + $0x1c] sm:$0xf] }
  0x26   : > { %431 = vst.msk [vmem:[#allocation2 + $0x10] sm:$0xf] %vm210_vm0, %v279_v32  ;;  %436 = vst [vmem:[#allocation2 + $0x14] sm:$0x1] %v435_v33  ;;  %v295_v39 = vor.u32 %v293_v19, %v292_v27  ;;  %v297_v40 = vrot.slane %v292_v27, 4  ;;  %v301_v42 = vrot.slane %v299_v28, 7 }
  0x27   : > { %v309_v43 = vrot.slane %v307_v36, 7  ;;  %v310_v44 = vshll.u32 %v250_v25, 16  ;;  %v316_v45 = vshrl.u32 %v251_v30, 16  ;;  %v253_v46 = vld [vmem:[%s2595_s15 + $0x20] sm:$0xf]  ;;  %v438_v47 = vsel %vm2600_vm5, %v287_v37, %v437_v34 }
  0x28   : > { %v296_v48 = vsel %vm2607_vm6, %v288_v38, %v295_v39  ;;  %v442_v49 = vsel %vm2613_vm7, %v297_v40, %v441_v35  ;;  %v448_v51 = vld [vmem:[#allocation2 + $0x2c] sm:$0x1]  ;;  %v319_v52 = vshll.u32 %v251_v30, 16  ;;  %439 = vst [vmem:[#allocation2 + $0x18] sm:$0xf] %v438_v47  ;;  %v304_v53 = vor.u32 %v302_v29, %v301_v42 }
  0x29   : > { %440 = vst.msk [vmem:[#allocation2 + $0x1c] sm:$0xf] %vm210_vm0, %v296_v48  ;;  %443 = vst [vmem:[#allocation2 + $0x20] sm:$0x1] %v442_v49  ;;  %v305_v54 = vrot.slane %v301_v42, 4  ;;  %v312_v55 = vor.u32 %v310_v44, %v309_v43  ;;  %v314_v56 = vrot.slane %v309_v43, 4 }
  0x2a   : > { %v254_v57 = vld [vmem:[%s2595_s15 + $0x24] sm:$0xf]  ;;  %v318_v58 = vrot.slane %v316_v45, 7  ;;  %v324_v59 = vshrl.u32 %v252_v41, 16  ;;  %v327_v60 = vshll.u32 %v252_v41, 16  ;;  %v333_v61 = vshrl.u32 %v253_v46, 16 }
  0x2b   : > { %v255_v62 = vld [vmem:[%s2595_s15 + $0x28] sm:$0xf]  ;;  %v445_v63 = vsel %vm2600_vm5, %v304_v53, %v444_v50  ;;  %v313_v0 = vsel %vm2607_vm6, %v305_v54, %v312_v55  ;;  %v449_v1 = vsel %vm2613_vm7, %v314_v56, %v448_v51  ;;  %v451_v2 = vld [vmem:[#allocation2 + $0x30] sm:$0xf]  ;;  %v455_v3 = vld [vmem:[#allocation2 + $0x38] sm:$0x1] }
  0x2c   : > { %v336_v4 = vshll.u32 %v253_v46, 16  ;;  %446 = vst [vmem:[#allocation2 + $0x24] sm:$0xf] %v445_v63  ;;  %447 = vst.msk [vmem:[#allocation2 + $0x28] sm:$0xf] %vm210_vm0, %v313_v0  ;;  %v321_v6 = vor.u32 %v319_v52, %v318_v58  ;;  %v322_v7 = vrot.slane %v318_v58, 4 }
  0x2d   : > { %450 = vst [vmem:[#allocation2 + $0x2c] sm:$0x1] %v449_v1  ;;  %v326_v8 = vrot.slane %v324_v59, 7  ;;  %v335_v9 = vrot.slane %v333_v61, 7  ;;  %v256_v10 = vld [vmem:[%s2595_s15 + $0x2c] sm:$0xf] }
  0x2e   : > { %v458_v11 = vld [vmem:[#allocation2 + $0x3c] sm:$0xf]  ;;  %v341_v13 = vshrl.u32 %v254_v57, 16  ;;  %v344_v14 = vshll.u32 %v254_v57, 16  ;;  %v350_v15 = vshrl.u32 %v255_v62, 16  ;;  %v353_v17 = vshll.u32 %v255_v62, 16 }
  0x2f   : > { %v452_v18 = vsel %vm2600_vm5, %v321_v6, %v451_v2  ;;  %v329_v19 = vor.u32 %v327_v60, %v326_v8  ;;  %v331_v20 = vrot.slane %v326_v8, 4  ;;  %v338_v21 = vor.u32 %v336_v4, %v335_v9  ;;  %v257_v22 = vld [vmem:[%s2595_s15 + $0x30] sm:$0xf]  ;;  %v258_v27 = vld [vmem:[%s2595_s15 + $0x34] sm:$0xf] }
  0x30   : > { %453 = vst [vmem:[#allocation2 + $0x30] sm:$0xf] %v452_v18  ;;  %v339_v23 = vrot.slane %v335_v9, 4  ;;  %v343_v24 = vrot.slane %v341_v13, 7  ;;  %v352_v25 = vrot.slane %v350_v15, 7  ;;  %v358_v26 = vshrl.u32 %v256_v10, 16 }
  0x31   : > { %v330_v28 = vsel %vm2607_vm6, %v322_v7, %v329_v19  ;;  %v456_v29 = vsel %vm2613_vm7, %v331_v20, %v455_v3  ;;  %v459_v30 = vsel %vm2600_vm5, %v338_v21, %v458_v11  ;;  %v462_v31 = vld [vmem:[#allocation2 + $0x44] sm:$0x1]  ;;  %v465_v32 = vld [vmem:[#allocation2 + $0x48] sm:$0xf]  ;;  %v361_v33 = vshll.u32 %v256_v10, 16 }
  0x32   : > { %454 = vst.msk [vmem:[#allocation2 + $0x34] sm:$0xf] %vm210_vm0, %v330_v28  ;;  %457 = vst [vmem:[#allocation2 + $0x38] sm:$0x1] %v456_v29  ;;  %v346_v34 = vor.u32 %v344_v14, %v343_v24  ;;  %v348_v35 = vrot.slane %v343_v24, 4  ;;  %v355_v36 = vor.u32 %v353_v17, %v352_v25  ;;  %v356_v37 = vrot.slane %v352_v25, 4 }
  0x33   : > { %460 = vst [vmem:[#allocation2 + $0x3c] sm:$0xf] %v459_v30  ;;  %v259_v38 = vld [vmem:[%s2595_s15 + $0x38] sm:$0xf]  ;;  %v360_v39 = vrot.slane %v358_v26, 7  ;;  %v367_v40 = vshrl.u32 %v257_v22, 16 }
  0x34   : > { %v370_v41 = vshll.u32 %v257_v22, 16  ;;  %v375_v42 = vshrl.u32 %v258_v27, 16  ;;  %v260_v43 = vld [vmem:[%s2595_s15 + $0x3c] sm:$0xf]  ;;  %v347_v44 = vsel %vm2607_vm6, %v339_v23, %v346_v34  ;;  %v463_v45 = vsel %vm2613_vm7, %v348_v35, %v462_v31  ;;  %v469_v47 = vld [vmem:[#allocation2 + $0x50] sm:$0x1] }
  0x35   : > { %v466_v46 = vsel %vm2600_vm5, %v355_v36, %v465_v32  ;;  %v378_v48 = vshll.u32 %v258_v27, 16  ;;  %461 = vst.msk [vmem:[#allocation2 + $0x40] sm:$0xf] %vm210_vm0, %v347_v44  ;;  %464 = vst [vmem:[#allocation2 + $0x44] sm:$0x1] %v463_v45  ;;  %v363_v49 = vor.u32 %v361_v33, %v360_v39  ;;  %v365_v50 = vrot.slane %v360_v39, 4 }
  0x36   : > { %467 = vst [vmem:[#allocation2 + $0x48] sm:$0xf] %v466_v46  ;;  %v369_v51 = vrot.slane %v367_v40, 7  ;;  %v377_v52 = vrot.slane %v375_v42, 7  ;;  %v472_v53 = vld [vmem:[#allocation2 + $0x54] sm:$0xf] }
  0x37   : > { %v384_v54 = vshrl.u32 %v259_v38, 16  ;;  %v387_v55 = vshll.u32 %v259_v38, 16  ;;  %v392_v56 = vshrl.u32 %v260_v43, 16  ;;  %v395_v57 = vshll.u32 %v260_v43, 16  ;;  %v476_v62 = vld [vmem:[#allocation2 + $0x5c] sm:$0x1] }
  0x38   : > { %v364_v58 = vsel %vm2607_vm6, %v356_v37, %v363_v49  ;;  %v470_v59 = vsel %vm2613_vm7, %v365_v50, %v469_v47  ;;  %v372_v60 = vor.u32 %v370_v41, %v369_v51  ;;  %v373_v61 = vrot.slane %v369_v51, 4  ;;  %v479_v4 = vld [vmem:[#allocation2 + $0x60] sm:$0xf]  ;;  %v483_v10 = vld [vmem:[#allocation2 + $0x68] sm:$0x1] }
  0x39   : > { %468 = vst.msk [vmem:[#allocation2 + $0x4c] sm:$0xf] %vm210_vm0, %v364_v58  ;;  %471 = vst [vmem:[#allocation2 + $0x50] sm:$0x1] %v470_v59  ;;  %v380_v63 = vor.u32 %v378_v48, %v377_v52  ;;  %v382_v0 = vrot.slane %v377_v52, 4  ;;  %v386_v1 = vrot.slane %v384_v54, 7 }
  0x3a   : > { %v394_v2 = vrot.slane %v392_v56, 7  ;;  %v473_v3 = vsel %vm2600_vm5, %v372_v60, %v472_v53  ;;  %489 = sbr.rel (%p2093_p10) target bundleno = 69 (0x45), region = 40  ;;  %v494_v18 = vld [vmem:[%s493_s26] sm:$0xf] (!%p2093_p10)  ;;  %v495_v19 = vld [vmem:[%s493_s26 + $0x4] sm:$0xf] (!%p2093_p10) }
  0x3b   : > { %474 = vst [vmem:[#allocation2 + $0x54] sm:$0xf] %v473_v3  ;;  %v381_v6 = vsel %vm2607_vm6, %v373_v61, %v380_v63  ;;  %v477_v7 = vsel %vm2613_vm7, %v382_v0, %v476_v62  ;;  %v389_v8 = vor.u32 %v387_v55, %v386_v1  ;;  %v390_v9 = vrot.slane %v386_v1, 4  ;;  %v516_v26 = vld [vmem:[#allocation2] sm:$0xf] (!%p2093_p10) }
  0x3c   : > { %475 = vst.msk [vmem:[#allocation2 + $0x58] sm:$0xf] %vm210_vm0, %v381_v6  ;;  %478 = vst [vmem:[#allocation2 + $0x5c] sm:$0x1] %v477_v7  ;;  %v397_v11 = vor.u32 %v395_v57, %v394_v2  ;;  %v399_v13 = vrot.slane %v394_v2, 4  ;;  %v497_v20 = vshrl.u32 (!%p2093_p10), %v494_v18, 16 }
  0x3d   : > { %v480_v14 = vsel %vm2600_vm5, %v389_v8, %v479_v4  ;;  %v500_v21 = vshll.u32 (!%p2093_p10), %v494_v18, 16  ;;  %v505_v22 = vshrl.u32 (!%p2093_p10), %v495_v19, 16  ;;  %v508_v23 = vshll.u32 (!%p2093_p10), %v495_v19, 16  ;;  %v520_v27 = vld [vmem:[#allocation2 + $0x8] sm:$0x1] (!%p2093_p10) }
  0x3e   : > { %481 = vst [vmem:[#allocation2 + $0x60] sm:$0xf] %v480_v14  ;;  %v398_v15 = vsel %vm2607_vm6, %v390_v9, %v397_v11  ;;  %v484_v17 = vsel %vm2613_vm7, %v399_v13, %v483_v10  ;;  %v499_v24 = vrot.slane (!%p2093_p10), %v497_v20, 7 }
  0x3f   : > { %482 = vst.msk [vmem:[#allocation2 + $0x64] sm:$0xf] %vm210_vm0, %v398_v15  ;;  %485 = vst [vmem:[#allocation2 + $0x68] sm:$0x1] %v484_v17  ;;  %v507_v25 = vrot.slane (!%p2093_p10), %v505_v22, 7 }
  0x40   : > { %v502_v28 = vor.u32 (!%p2093_p10), %v500_v21, %v499_v24  ;;  %v503_v29 = vrot.slane (!%p2093_p10), %v499_v24, 4 }
  0x41   : > { %v510_v30 = vor.u32 %v508_v23, %v507_v25  ;;  %v512_v31 = vrot.slane %v507_v25, 4 }
  0x42   : > { %v517_v32 = vsel %vm2600_vm5, %v502_v28, %v516_v26 }
  0x43   : > { %v511_v33 = vsel %vm2607_vm6, %v503_v29, %v510_v30  ;;  %v521_v34 = vsel %vm2613_vm7, %v512_v31, %v520_v27  ;;  %518 = vst [vmem:[#allocation2] sm:$0xf] %v517_v32 }
  0x44   : > { %519 = vst.msk [vmem:[#allocation2 + $0x4] sm:$0xf] %vm210_vm0, %v511_v33  ;;  %522 = vst [vmem:[#allocation2 + $0x8] sm:$0x1] %v521_v34 }
  0x45 PF: > { %p2097_p11 = scmp.ge.s32.totalorder %s2435_s19, 1 }
  0x46   : > { %v2100_v35 = vld [vmem:[%s2595_s15 + $0x40] sm:$0xf] (!%p2097_p11)  ;;  %v2101_v36 = vld [vmem:[%s2595_s15 + $0x44] sm:$0xf] (!%p2097_p11)  ;;  %v554_v43 = vld [vmem:[#allocation2 + $0x6c] sm:$0xf] (!%p2097_p11) }
  0x47   : > { %526 = sbr.rel (%p2097_p11) target bundleno = 80 (0x50), region = 44  ;;  %v534_v37 = vshrl.u32 (!%p2097_p11), %v2100_v35, 16  ;;  %v537_v38 = vshll.u32 (!%p2097_p11), %v2100_v35, 16  ;;  %v542_v39 = vshrl.u32 (!%p2097_p11), %v2101_v36, 16  ;;  %v545_v40 = vshll.u32 (!%p2097_p11), %v2101_v36, 16 }
  0x48   : > { %v558_v44 = vld [vmem:[#allocation2 + $0x74] sm:$0x1] (!%p2097_p11) }
  0x49   : > { %v536_v41 = vrot.slane (!%p2097_p11), %v534_v37, 7  ;;  %v544_v42 = vrot.slane (!%p2097_p11), %v542_v39, 7 }
  0x4b   : > { %v539_v45 = vor.u32 (!%p2097_p11), %v537_v38, %v536_v41  ;;  %v540_v46 = vrot.slane (!%p2097_p11), %v536_v41, 4  ;;  %v547_v47 = vor.u32 (!%p2097_p11), %v545_v40, %v544_v42  ;;  %v549_v48 = vrot.slane (!%p2097_p11), %v544_v42, 4 }
  0x4d   : > { %v555_v49 = vsel (!%p2097_p11), %vm2600_vm5, %v539_v45, %v554_v43  ;;  %v548_v50 = vsel (!%p2097_p11), %vm2607_vm6, %v540_v46, %v547_v47  ;;  %v559_v51 = vsel (!%p2097_p11), %vm2613_vm7, %v549_v48, %v558_v44 }
  0x4e   : > { %556 = vst [vmem:[#allocation2 + $0x6c] sm:$0xf] %v555_v49  ;;  %557 = vst.msk [vmem:[#allocation2 + $0x70] sm:$0xf] %vm210_vm0, %v548_v50 }
  0x4f   : > { %560 = vst [vmem:[#allocation2 + $0x74] sm:$0x1] %v559_v51 }
  0x50 PF: > { %v570_v52 = vld [vmem:[#allocation2 + $0x34] sm:$0xf]  ;;  %v589_v53 = vld [vmem:[#allocation2 + $0x30] sm:$0xe]  ;;  %vm859_vm8 = vcmask 1046528   ;;  %s2454_s28 = smov 8  }
  0x51   : > { %v2322_v54 = vld [vmem:[#allocation2 + $0x38] ss:$0 sps:$4 sm:$0x11]   ;;  %v2122_v55 = vcombine.low %v589_v53, %v570_v52  ;;  %v569_v56 = vld [vmem:[#allocation2 + $0x30] sm:$0xf]  ;;  %s2455_s29 = smov 4  }
  0x52   : > { %v562_v57 = vld [vmem:[#allocation2 + $0x4] sm:$0xf]  ;;  %v873_v58 = vrot.slane %v2322_v54, 1  ;;  %v585_v59 = vld [vmem:[#allocation2] sm:$0xe]  ;;  %v779_v63 = vshll.u32 %v2322_v54, 16  ;;  %v2712_v1 = vcombine.low %v569_v56, %v570_v52 }
  0x53   : > { %v872_v5 = vrot.slane %v2122_v55, 1  ;;  %v561_v12 = vld [vmem:[#allocation2] sm:$0xf]  ;;  %v2325_v60 = vld [vmem:[#allocation2 + $0x8] ss:$0 sps:$4 sm:$0x11]   ;;  %v2118_v61 = vcombine.low %v585_v59, %v562_v57 }
  0x54   : > { %v2709_v16 = vcombine.low %v561_v12, %v562_v57  ;;  %v563_v62 = vld [vmem:[#allocation2 + $0xc] sm:$0xf]  ;;  %v564_v2 = vld [vmem:[#allocation2 + $0x10] sm:$0xf]  ;;  %vm722_vm9 = vsmask.f32 7424 }
  0x55   : > { %v874_v0 = vsel %vm859_vm8, %v872_v5, %v873_v58  ;;  %v860_v3 = vrot.slane %v2118_v61, 1  ;;  %v861_v4 = vrot.slane %v2325_v60, 1  ;;  %v2715_v6 = vcombine.low %v563_v62, %v564_v2  ;;  %v2329_v7 = vld [vmem:[#allocation2 + $0x14] ss:$0 sps:$4 sm:$0x11]   ;;  %s2456_s30 = smov 12  }
  0x56   : > { %892 = vrot.lane.b32.xlu1 %v874_v0, %s2454_s28  ;;  %v724_v8 = vshrl.u32 %v2709_v16, 16  ;;  %v726_v9 = vshll.u32 %v2709_v16, 16  ;;  %v731_v10 = vshll.u32 %v2325_v60, 16  ;;  %v571_v11 = vld [vmem:[#allocation2 + $0x3c] sm:$0xf]  ;;  %v743_v18 = vshll.u32 %v2329_v7, 16 }
  0x57   : > { %v572_v13 = vld [vmem:[#allocation2 + $0x40] sm:$0xf]  ;;  %v862_v14 = vsel %vm859_vm8, %v860_v3, %v861_v4  ;;  %v736_v15 = vshrl.u32 %v2715_v6, 16  ;;  %v738_v17 = vshll.u32 %v2715_v6, 16  ;;  %v772_v25 = vshrl.u32 %v2712_v1, 16  ;;  %s2457_s6 = smov 16  }
  0x58   : > { %884 = vrot.lane.b32.xlu0 %v862_v14, %s2454_s28  ;;  %v728_v19 = vrot.slane %v726_v9, 1  ;;  %v733_v20 = vrot.slane %v731_v10, 1  ;;  %v2723_v21 = vcombine.low %v571_v11, %v572_v13  ;;  %v2331_v22 = vld [vmem:[#allocation2 + $0x44] ss:$0 sps:$4 sm:$0x11]   ;;  %v745_v24 = vrot.slane %v743_v18, 1 }
  0x59   : > { %v740_v23 = vrot.slane %v738_v17, 1  ;;  %v774_v26 = vshll.u32 %v2712_v1, 16  ;;  %v590_v27 = vld [vmem:[#allocation2 + $0x3c] sm:$0xe]  ;;  %v791_v31 = vshll.u32 %v2331_v22, 16  ;;  %v781_v35 = vrot.slane %v779_v63, 1 }
  0x5a   : > { %v729_v28 = vor.u32 %v728_v19, %v724_v8  ;;  %v784_v29 = vshrl.u32 %v2723_v21, 16  ;;  %v786_v30 = vshll.u32 %v2723_v21, 16  ;;  %v586_v32 = vld [vmem:[#allocation2 + $0xc] sm:$0xe]  ;;  %v2123_v36 = vcombine.low %v590_v27, %v572_v13  ;;  %v601_v37 = vld [vmem:[#allocation2 + $0x3c] sm:$0xf] }
  0x5b   : > { %v741_v33 = vor.u32 %v740_v23, %v736_v15  ;;  %v776_v34 = vrot.slane %v774_v26, 1  ;;  %v2729_v38 = vld [vmem:[#allocation2 + $0x40] sm:$0xf]  ;;  %v793_v41 = vrot.slane %v791_v31, 1  ;;  %v2119_v42 = vcombine.low %v586_v32, %v564_v2  ;;  %v593_v43 = vld [vmem:[#allocation2 + $0xc] sm:$0xf] }
  0x5c   : > { %v734_v39 = vsel %vm722_vm9, %v729_v28, %v733_v20  ;;  %v788_v40 = vrot.slane %v786_v30, 1  ;;  %v2734_v46 = vld [vmem:[#allocation2 + $0x10] sm:$0xf]  ;;  %v864_v49 = vrot.slane %v2329_v7, 1  ;;  %v2130_v50 = vcombine.low %v601_v37, %v2729_v38  ;;  %v595_v55 = vld [vmem:[#allocation2 + $0x18] sm:$0xf] }
  0x5d   : > { %v746_v44 = vsel %vm722_vm9, %v741_v33, %v745_v24  ;;  %819 = vrot.lane.b32.xlu0 %v734_v39, %s2455_s29  ;;  %v777_v45 = vor.u32 %v776_v34, %v772_v25  ;;  %v863_v48 = vrot.slane %v2119_v42, 1  ;;  %v875_v52 = vrot.slane %v2123_v36, 1  ;;  %v2740_v56 = vld [vmem:[#allocation2 + $0x1c] sm:$0xf]  ;;  %v603_v5 = vld [vmem:[#allocation2 + $0x48] sm:$0xf] }
  0x5e   : > { %821 = vrot.lane.b32.xlu1 %v746_v44, %s2455_s29  ;;  %v789_v47 = vor.u32 %v788_v40, %v784_v29  ;;  %v876_v53 = vrot.slane %v2331_v22, 1  ;;  %v2126_v54 = vcombine.low %v593_v43, %v2734_v46  ;;  %v2743_v58 = vld [vmem:[#allocation2 + $0x4c] sm:$0xf]  ;;  %v1031_v59 = vshll.u32 %v2130_v50, 16  ;;  %v621_v29 = vld [vmem:[#allocation2 + $0x3c] sm:$0xe] }
  0x5f   : > { %v782_v51 = vsel %vm722_vm9, %v777_v45, %v781_v35  ;;  %v865_v60 = vsel %vm859_vm8, %v863_v48, %v864_v49  ;;  %v2127_v61 = vcombine.low %v595_v55, %v2740_v56  ;;  %v2749_v62 = vld [vmem:[#allocation2 + $0x14] ss:$0 sps:$4 sm:$0x11]   ;;  %v2131_v0 = vcombine.low %v603_v5, %v2743_v58  ;;  %v2753_v2 = vld [vmem:[#allocation2 + $0x44] ss:$0 sps:$4 sm:$0x11]  }
  0x60   : > { %v794_v57 = vsel %vm722_vm9, %v789_v47, %v793_v41  ;;  %v983_v12 = vshll.u32 %v2126_v54, 16  ;;  %v877_v63 = vsel %vm859_vm8, %v875_v52, %v876_v53  ;;  %v1029_v3 = vshrl.u32 %v2130_v50, 16  ;;  %v2758_v11 = vld [vmem:[#allocation2 + $0x20] ss:$0 sps:$4 sm:$0x11]   ;;  %s2458_s7 = smov 20  }
  0x61   : > { %827 = vrot.lane.b32.xlu0 %v782_v51, %s2455_s29  ;;  %v1033_v4 = vrot.slane %v1031_v59, 1  ;;  %v981_v7 = vshrl.u32 %v2126_v54, 16  ;;  %v995_v9 = vshll.u32 %v2127_v61, 16  ;;  %v988_v10 = vshll.u32 %v2749_v62, 16  ;;  %v617_v19 = vld [vmem:[#allocation2 + $0xc] sm:$0xe] }
  0x62   : > { %829 = vrot.lane.b32.xlu1 %v794_v57, %s2455_s29  ;;  %v985_v8 = vrot.slane %v983_v12, 1  ;;  %v1043_v13 = vshll.u32 %v2131_v0, 16  ;;  %v1036_v14 = vshll.u32 %v2753_v2, 16  ;;  %v2761_v15 = vld [vmem:[#allocation2 + $0x50] ss:$0 sps:$4 sm:$0x11]   ;;  %v2142_v30 = vcombine.low %v617_v19, %v2734_v46 }
  0x63   : > { %v1034_v17 = vor.u32 %v1033_v4, %v1029_v3  ;;  %v990_v20 = vrot.slane %v988_v10, 1  ;;  %v993_v22 = vshrl.u32 %v2127_v61, 16  ;;  %v997_v23 = vrot.slane %v995_v9, 1  ;;  %v618_v31 = vld [vmem:[#allocation2 + $0x18] sm:$0xe]  ;;  %s2459_s8 = smov 24  }
  0x64   : > { %v986_v18 = vor.u32 %v985_v8, %v981_v7  ;;  %v1000_v24 = vshll.u32 %v2758_v11, 16  ;;  %v1038_v25 = vrot.slane %v1036_v14, 1  ;;  %v1041_v26 = vshrl.u32 %v2131_v0, 16  ;;  %v622_v40 = vld [vmem:[#allocation2 + $0x48] sm:$0xe]  ;;  %s2460_s13 = smov 28  }
  0x65   : > { %886 = vrot.lane.b32.xlu0 %v865_v60, %s2454_s28  ;;  %v1045_v27 = vrot.slane %v1043_v13, 1  ;;  %v1048_v28 = vshll.u32 %v2761_v15, 16  ;;  %v998_v33 = vor.u32 %v997_v23, %v993_v22  ;;  %v2146_v35 = vcombine.low %v621_v29, %v2729_v38  ;;  %v634_v41 = vld [vmem:[#allocation2 + $0x48] sm:$0xf]  ;;  %v2776_v45 = vld [vmem:[#allocation2 + $0x4c] sm:$0xf] }
  0x66   : > { %894 = vrot.lane.b32.xlu1 %v877_v63, %s2454_s28  ;;  %v991_v32 = vsel %vm722_vm9, %v986_v18, %v990_v20  ;;  %v1002_v34 = vrot.slane %v1000_v24, 1  ;;  %v1039_v36 = vsel %vm722_vm9, %v1034_v17, %v1038_v25  ;;  %v2143_v42 = vcombine.low %v618_v31, %v2740_v56  ;;  %v626_v46 = vld [vmem:[#allocation2 + $0x18] sm:$0xf]  ;;  %v2780_v47 = vld [vmem:[#allocation2 + $0x1c] sm:$0xf]  ;;  %s2461_s14 = smov 32  }
  0x67   : > { %v1046_v37 = vor.u32 %v1045_v27, %v1041_v26  ;;  %v1050_v39 = vrot.slane %v1048_v28, 1  ;;  %v1116_v43 = vrot.slane %v2142_v30, 1  ;;  %v1117_v44 = vrot.slane %v2749_v62, 1  ;;  %v636_v56 = vld [vmem:[#allocation2 + $0x54] sm:$0xf]  ;;  %s1693_s25 = sld [smem:[#allocation3]] }
  0x68   : > { %v1003_v38 = vsel %vm722_vm9, %v998_v33, %v1002_v34  ;;  %v2147_v48 = vcombine.low %v622_v40, %v2743_v58  ;;  %v1129_v51 = vrot.slane %v2753_v2, 1  ;;  %v2154_v52 = vcombine.low %v634_v41, %v2776_v45  ;;  %v2789_v57 = vld [vmem:[#allocation2 + $0x58] sm:$0xf]  ;;  %v628_v58 = vld [vmem:[#allocation2 + $0x24] sm:$0xf] }
  0x69   : > { %940 = vrot.lane.b32.xlu0 %v2126_v54, %s2456_s30  ;;  %v1051_v49 = vsel %vm722_vm9, %v1046_v37, %v1050_v39  ;;  %v1119_v53 = vrot.slane %v2143_v42, 1  ;;  %v1120_v54 = vrot.slane %v2758_v11, 1  ;;  %v2150_v55 = vcombine.low %v626_v46, %v2780_v47  ;;  %v2793_v59 = vld [vmem:[#allocation2 + $0x28] sm:$0xf]  ;;  %v2815_v23 = vld [vmem:[#allocation2 + $0x4c] sm:$0xf] }
  0x6a   : > { %948 = vrot.lane.b32.xlu1 %v2130_v50, %s2456_s30  ;;  %v1128_v50 = vrot.slane %v2146_v35, 1  ;;  %v1118_v5 = vsel %vm859_vm8, %v1116_v43, %v1117_v44  ;;  %v1131_v60 = vrot.slane %v2147_v48, 1  ;;  %v1287_v62 = vshll.u32 %v2154_v52, 16  ;;  %v2802_v4 = vld [vmem:[#allocation2 + $0x50] ss:$0 sps:$4 sm:$0x11]  }
  0x6b   : > { %v2155_v63 = vcombine.low %v636_v56, %v2789_v57  ;;  %v2151_v2 = vcombine.low %v628_v58, %v2793_v59  ;;  %v1121_v3 = vsel %vm859_vm8, %v1119_v53, %v1120_v54  ;;  %v2804_v7 = vld [vmem:[#allocation2 + $0x20] ss:$0 sps:$4 sm:$0x11]   ;;  %v1285_v10 = vshrl.u32 %v2154_v52, 16  ;;  %v573_v22 = vld [vmem:[#allocation2 + $0x48] sm:$0xf] }
  0x6c   : > { %v1130_v12 = vsel %vm859_vm8, %v1128_v50, %v1129_v51  ;;  %v1289_v11 = vrot.slane %v1287_v62, 1  ;;  %v2807_v13 = vld [vmem:[#allocation2 + $0x5c] ss:$0 sps:$4 sm:$0x11]   ;;  %v1292_v17 = vshll.u32 %v2802_v4, 16  ;;  %v1237_v18 = vshrl.u32 %v2150_v55, 16 }
  0x6d   : > { %942 = vrot.lane.b32.xlu0 %v2127_v61, %s2456_s30  ;;  %v1132_v61 = vrot.slane %v2761_v15, 1  ;;  %v1299_v9 = vshll.u32 %v2155_v63, 16  ;;  %v1251_v14 = vshll.u32 %v2151_v2, 16  ;;  %v2810_v15 = vld [vmem:[#allocation2 + $0x2c] ss:$0 sps:$4 sm:$0x11]   ;;  %v2827_v37 = vcombine.low %v573_v22, %v2815_v23 }
  0x6e   : > { %950 = vrot.lane.b32.xlu1 %v2131_v0, %s2456_s30  ;;  %v1239_v0 = vshll.u32 %v2150_v55, 16  ;;  %v1244_v20 = vshll.u32 %v2804_v7, 16  ;;  %v565_v24 = vld [vmem:[#allocation2 + $0x18] sm:$0xf]  ;;  %v2817_v25 = vld [vmem:[#allocation2 + $0x1c] sm:$0xf]  ;;  %v1290_v40 = vor.u32 %v1289_v11, %v1285_v10 }
  0x6f   : > { %v1133_v8 = vsel %vm859_vm8, %v1131_v60, %v1132_v61  ;;  %v654_v26 = vld [vmem:[#allocation2 + $0x48] sm:$0xe]  ;;  %v650_v27 = vld [vmem:[#allocation2 + $0x18] sm:$0xe]  ;;  %v1297_v28 = vshrl.u32 %v2155_v63, 16  ;;  %v1301_v29 = vrot.slane %v1299_v9, 1  ;;  %v2830_v39 = vcombine.low %v565_v24, %v2817_v25 }
  0x70   : > { %v1241_v19 = vrot.slane %v1239_v0, 1  ;;  %v1304_v30 = vshll.u32 %v2807_v13, 16  ;;  %v1249_v31 = vshrl.u32 %v2151_v2, 16  ;;  %v1256_v33 = vshll.u32 %v2810_v15, 16  ;;  %v2394_v34 = vld [vmem:[%s3300_s1] sm:$0xff]   ;;  %v2395_v44 = vld [vmem:[%s3300_s1 + $0x8] sm:$0xff]  }
  0x71   : > { %1076 = vrot.lane.b32.xlu0 %v991_v32, %s2457_s6  ;;  %v1253_v32 = vrot.slane %v1251_v14, 1  ;;  %v1294_v41 = vrot.slane %v1292_v17, 1  ;;  %2226 = vmatprep.subr.bf16.mxu0 %v2394_v34  ;;  %v2170_v42 = vcombine.low %v654_v26, %v2776_v45  ;;  %v2166_v43 = vcombine.low %v650_v27, %v2780_v47  ;;  %v2838_v50 = vld [vmem:[#allocation2 + $0x50] ss:$0 sps:$4 sm:$0x11]  }
  0x72   : > { %1084 = vrot.lane.b32.xlu1 %v1039_v36, %s2457_s6  ;;  %v1242_v35 = vor.u32 %v1241_v19, %v1237_v18  ;;  %v1246_v36 = vrot.slane %v1244_v20, 1  ;;  %2248 = vmatprep.subr.bf16.mxu1 %v2394_v34  ;;  %v1306_v46 = vrot.slane %v1304_v30, 1  ;;  %v798_v47 = vshll.u32 %v2827_v37, 16  ;;  %v2843_v51 = vld [vmem:[#allocation2 + $0x20] ss:$0 sps:$4 sm:$0x11]  }
  0x73   : > { %2227 = vmatpush3.bf16.msra.mxu0 %v2394_v34  ;;  %2251 = vmatpush3.bf16.msra.mxu1 %v2394_v34  ;;  %v1254_v48 = vor.u32 %v1253_v32, %v1249_v31  ;;  %v1295_v53 = vsel %vm722_vm9, %v1290_v40, %v1294_v41  ;;  %v567_v54 = vld [vmem:[#allocation2 + $0x24] sm:$0xf]  ;;  %v1384_v56 = vrot.slane %v2170_v42, 1  ;;  %v575_v58 = vld [vmem:[#allocation2 + $0x54] sm:$0xf]  ;;  %v1373_v0 = vrot.slane %v2804_v7, 1 }
  0x74   : > { %v1247_v45 = vsel %vm722_vm9, %v1242_v35, %v1246_v36  ;;  %2228 = vmatprep.subr.bf16.mxu0 %v2395_v44  ;;  %2249 = vmatprep.subr.bf16.mxu1 %v2395_v44  ;;  %v655_v60 = vld [vmem:[#allocation2 + $0x54] sm:$0xe]  ;;  %v796_v10 = vshrl.u32 %v2827_v37, 16  ;;  %v800_v11 = vrot.slane %v798_v47, 1  ;;  %v803_v14 = vshll.u32 %v2838_v50, 16 }
  0x75   : > { %1078 = vrot.lane.b32.xlu0 %v1003_v38, %s2457_s6  ;;  %v1302_v38 = vor.u32 %v1301_v29, %v1297_v28  ;;  %v2171_v7 = vcombine.low %v655_v60, %v2789_v57  ;;  %v2872_v24 = vld [vmem:[#allocation2 + $0x2c] ss:$0 sps:$4 sm:$0x11]   ;;  %v2876_v30 = vld [vmem:[#allocation2 + $0x5c] ss:$0 sps:$4 sm:$0x11]  }
  0x76   : > { %1086 = vrot.lane.b32.xlu1 %v1051_v49, %s2457_s6  ;;  %v1258_v49 = vrot.slane %v1256_v33, 1  ;;  %v801_v28 = vor.u32 %v800_v11, %v796_v10  ;;  %v805_v29 = vrot.slane %v803_v14, 1  ;;  %v1388_v31 = vrot.slane %v2807_v13, 1  ;;  %v587_v13 = vld [vmem:[#allocation2 + $0x18] sm:$0xe] }
  0x77   : > { %2229 = vmatpush3.bf16.msra.mxu0 %v2395_v44  ;;  %2252 = vmatpush3.bf16.msra.mxu1 %v2395_v44  ;;  %v1307_v61 = vsel %vm722_vm9, %v1302_v38, %v1306_v46  ;;  %v1376_v33 = vrot.slane %v2810_v15, 1  ;;  %v767_v40 = vshll.u32 %v2872_v24, 16  ;;  %v815_v44 = vshll.u32 %v2876_v30, 16  ;;  %v591_v38 = vld [vmem:[#allocation2 + $0x48] sm:$0xe] }
  0x78   : > { %v1259_v62 = vsel %vm722_vm9, %v1254_v48, %v1258_v49  ;;  %v806_v41 = vsel %vm722_vm9, %v801_v28, %v805_v29  ;;  %v2120_v49 = vcombine.low %v587_v13, %v2817_v25  ;;  %v867_v60 = vrot.slane %v2843_v51, 1  ;;  %v597_v25 = vld [vmem:[#allocation2 + $0x24] sm:$0xf]  ;;  %v599_v14 = vld [vmem:[#allocation2 + $0x30] sm:$0xf] }
  0x79   : > { %1140 = vrot.lane.b32.xlu0 %v1118_v5, %s2458_s7  ;;  %v1385_v5 = vrot.slane %v2802_v4, 1  ;;  %v769_v48 = vrot.slane %v767_v40, 1  ;;  %v870_v11 = vrot.slane %v2872_v24, 1  ;;  %v2926_v28 = vld [vmem:[#allocation2 + $0x2c] ss:$0 sps:$4 sm:$0x11]  }
  0x7a   : > { %1148 = vrot.lane.b32.xlu1 %v1130_v12, %s2458_s7  ;;  %v2850_v12 = vld [vmem:[#allocation2 + $0x58] sm:$0xf]  ;;  %vm1592_vm10 = vcmask 1041408   ;;  %vm1412_vm11 = vcmask 31744   ;;  %vm1429_vm12 = vcmask 64512   ;;  %vm1446_vm13 = vcmask 97280  }
  0x7b   : > { %v2865_v17 = vcombine.low %v575_v58, %v2850_v12  ;;  %v1386_v27 = vsel %vm859_vm8, %v1384_v56, %v1385_v5  ;;  %v592_v56 = vld [vmem:[#allocation2 + $0x54] sm:$0xe]  ;;  %v866_v58 = vrot.slane %v2120_v49, 1  ;;  %v2935_v40 = vld [vmem:[#allocation2 + $0x38] ss:$0 sps:$4 sm:$0x11]  }
  0x7c   : > { %v1024_v49 = vshll.u32 %v2935_v40, 16  ;;  %vm1463_vm14 = vcmask 130048   ;;  %vm1480_vm15 = vcmask 162816   ;;  %vm1497_vm0 = vcmask 195584  }
  0x7d   : > { %1142 = vrot.lane.b32.xlu0 %v1121_v3, %s2458_s7  ;;  %v748_v3 = vshrl.u32 %v2830_v39, 16  ;;  %v810_v57 = vshll.u32 %v2865_v17, 16  ;;  %v808_v42 = vshrl.u32 %v2865_v17, 16  ;;  %vm1514_vm1 = vcmask 228352  }
  0x7e   : > { %1150 = vrot.lane.b32.xlu1 %v1133_v8, %s2458_s7  ;;  %v755_v8 = vshll.u32 %v2843_v51, 16  ;;  %v868_v51 = vsel %vm859_vm8, %v866_v58, %v867_v60  ;;  %v620_v58 = vld [vmem:[#allocation2 + $0x30] sm:$0xe]  ;;  %vm1531_vm2 = vcmask 261120   ;;  %vm1575_vm3 = vcmask 293888  }
  0x80   : > { %v757_v22 = vrot.slane %v755_v8, 1 }
  0x81   : > { %1196 = vrot.lane.b32.xlu0 %v2150_v55, %s2459_s8  ;;  %v2847_v55 = vld [vmem:[#allocation2 + $0x28] sm:$0xf] }
  0x82   : > { %1204 = vrot.lane.b32.xlu1 %v2154_v52, %s2459_s8  ;;  %v750_v52 = vshll.u32 %v2830_v39, 16  ;;  %v2860_v9 = vcombine.low %v567_v54, %v2847_v55  ;;  %v588_v54 = vld [vmem:[#allocation2 + $0x24] sm:$0xe] }
  0x84   : > { %v752_v4 = vrot.slane %v750_v52, 1  ;;  %v762_v26 = vshll.u32 %v2860_v9, 16  ;;  %v760_v35 = vshrl.u32 %v2860_v9, 16  ;;  %v817_v52 = vrot.slane %v815_v44, 1 }
  0x85   : > { %1198 = vrot.lane.b32.xlu0 %v2151_v2, %s2459_s8  ;;  %v651_v2 = vld [vmem:[#allocation2 + $0x24] sm:$0xe]  ;;  %v2938_v44 = vld [vmem:[#allocation2 + $0x68] ss:$0 sps:$4 sm:$0x11]  }
  0x86   : > { %1206 = vrot.lane.b32.xlu1 %v2155_v63, %s2459_s8  ;;  %v1372_v63 = vrot.slane %v2166_v43, 1  ;;  %v2167_v18 = vcombine.low %v651_v2, %v2793_v59  ;;  %v753_v20 = vor.u32 %v752_v4, %v748_v3  ;;  %v1387_v59 = vrot.slane %v2171_v7, 1  ;;  %v605_v3 = vld [vmem:[#allocation2 + $0x54] sm:$0xf]  ;;  %v2905_v4 = vld [vmem:[#allocation2 + $0x58] sm:$0xf] }
  0x87   : > { %v764_v36 = vrot.slane %v762_v26, 1  ;;  %v812_v43 = vrot.slane %v810_v57, 1  ;;  %v2125_v2 = vcombine.low %v592_v56, %v2850_v12  ;;  %v2132_v7 = vcombine.low %v605_v3, %v2905_v4  ;;  %v623_v56 = vld [vmem:[#allocation2 + $0x54] sm:$0xe]  ;;  %v624_v3 = vld [vmem:[#allocation2 + $0x60] sm:$0xe] }
  0x88   : > { %v1374_v19 = vsel %vm859_vm8, %v1372_v63, %v1373_v0  ;;  %v1375_v32 = vrot.slane %v2167_v18, 1  ;;  %v758_v34 = vsel %vm722_vm9, %v753_v20, %v757_v22  ;;  %v2915_v18 = vld [vmem:[#allocation2 + $0x34] sm:$0xf]  ;;  %v607_v20 = vld [vmem:[#allocation2 + $0x60] sm:$0xf] }
  0x89   : > { %1332 = vrot.lane.b32.xlu0 %v1247_v45, %s2460_s13  ;;  %v765_v46 = vor.u32 %v764_v36, %v760_v35  ;;  %v1389_v45 = vsel %vm859_vm8, %v1387_v59, %v1388_v31  ;;  %v813_v47 = vor.u32 %v812_v43, %v808_v42  ;;  %v881_v12 = vrot.slane %v2125_v2, 1  ;;  %v2920_v22 = vld [vmem:[#allocation2 + $0x64] sm:$0xf]  ;;  %v2930_v59 = vld [vmem:[#allocation2 + $0x5c] ss:$0 sps:$4 sm:$0x11]  }
  0x8a   : > { %1340 = vrot.lane.b32.xlu1 %v1295_v53, %s2460_s13  ;;  %v1377_v15 = vsel %vm859_vm8, %v1375_v32, %v1376_v33  ;;  %v2124_v53 = vcombine.low %v591_v38, %v2815_v23  ;;  %v879_v23 = vrot.slane %v2838_v50, 1  ;;  %v2133_v57 = vcombine.low %v607_v20, %v2920_v22 }
  0x8b   : > { %v770_v5 = vsel %vm722_vm9, %v765_v46, %v769_v48  ;;  %v818_v63 = vsel %vm722_vm9, %v813_v47, %v817_v52  ;;  %v1053_v35 = vshrl.u32 %v2132_v7, 16  ;;  %v1012_v36 = vshll.u32 %v2926_v28, 16 }
  0x8c   : > { %v878_v0 = vrot.slane %v2124_v53, 1  ;;  %v1060_v43 = vshll.u32 %v2930_v59, 16  ;;  %v1065_v38 = vshrl.u32 %v2133_v57, 16  ;;  %v1126_v20 = vrot.slane %v2935_v40, 1 }
  0x8d   : > { %1334 = vrot.lane.b32.xlu0 %v1259_v62, %s2460_s13  ;;  %v2900_v62 = vld [vmem:[#allocation2 + $0x28] sm:$0xf] }
  0x8e   : > { %1342 = vrot.lane.b32.xlu1 %v1307_v61, %s2460_s13  ;;  %v2121_v61 = vcombine.low %v588_v54, %v2847_v55  ;;  %v2128_v8 = vcombine.low %v597_v25, %v2900_v62  ;;  %v882_v55 = vrot.slane %v2876_v30, 1  ;;  %v880_v50 = vsel %vm859_vm8, %v878_v0, %v879_v23 }
  0x8f   : > { %v1055_v30 = vshll.u32 %v2132_v7, 16  ;;  %v1062_v52 = vrot.slane %v1060_v43, 1  ;;  %v1072_v54 = vshll.u32 %v2938_v44, 16  ;;  %v1026_v25 = vrot.slane %v1024_v49, 1 }
  0x90   : > { %v869_v10 = vrot.slane %v2121_v61, 1  ;;  %v1007_v26 = vshll.u32 %v2128_v8, 16  ;;  %v883_v29 = vsel %vm859_vm8, %v881_v12, %v882_v55  ;;  %v1005_v32 = vshrl.u32 %v2128_v8, 16  ;;  %v2958_v12 = vld [vmem:[#allocation2 + $0x34] sm:$0xf] }
  0x91   : > { %1396 = vrot.lane.b32.xlu0 %v1374_v19, %s2461_s14  ;;  %v2396_v19 = vld [vmem:[%s3300_s1 + $0x10] ss:$0 sps:$4 sm:$0x33]   ;;  %v1057_v42 = vrot.slane %v1055_v30, 1  ;;  %v1074_v2 = vrot.slane %v1072_v54, 1  ;;  %v1123_v55 = vrot.slane %v2926_v28, 1 }
  0x92   : > { %1404 = vrot.lane.b32.xlu1 %v1386_v27, %s2461_s14  ;;  %v871_v24 = vsel %vm859_vm8, %v869_v10, %v870_v11  ;;  %v2129_v27 = vcombine.low %v599_v14, %v2915_v18  ;;  %2254 = vmatprep.subr.msk.bf16.mxu0 %vm1592_vm10, %v2396_v19  ;;  %v1594_v31 = vsel %vm1592_vm10, %v2396_v19, 0  ;;  %v1009_v33 = vrot.slane %v1007_v26, 1  ;;  %v640_v26 = vld [vmem:[#allocation2 + $0x6c] sm:$0xf]  ;;  %v632_v28 = vld [vmem:[#allocation2 + $0x3c] sm:$0xf] }
  0x93   : > { %2255 = vmatprep.subr.msk.bf16.mxu1 %vm1592_vm10, %v2396_v19  ;;  %2231 = vmatpush3.bf16.msra.mxu0 %v1594_v31  ;;  %v1058_v47 = vor.u32 %v1057_v42, %v1053_v35  ;;  %v2149_v10 = vcombine.low %v624_v3, %v2920_v22  ;;  %v1135_v14 = vrot.slane %v2930_v59, 1  ;;  %v1138_v59 = vrot.slane %v2938_v44, 1  ;;  %v2390_v42 = vld [vmem:[#allocation2 + $0x68] ss:$0 sps:$4 sm:$0x11]  }
  0x94   : > { %2253 = vmatpush3.bf16.msra.mxu1 %v1594_v31  ;;  %v1010_v13 = vor.u32 %v1009_v33, %v1005_v32  ;;  %v1017_v46 = vshrl.u32 %v2129_v27, 16 }
  0x95   : > { %823 = vrot.lane.b32.xlu0 %v758_v34, %s2455_s29  ;;  %v1019_v34 = vshll.u32 %v2129_v27, 16  ;;  %v1063_v0 = vsel %vm722_vm9, %v1058_v47, %v1062_v52  ;;  %v2392_v47 = vld [vmem:[#allocation2 + $0x74] ss:$0 sps:$4 sm:$0x11]  }
  0x96   : > { %831 = vrot.lane.b32.xlu1 %v806_v41, %s2455_s29  ;;  %v1067_v41 = vshll.u32 %v2133_v57, 16 }
  0x97   : > { %v1021_v48 = vrot.slane %v1019_v34, 1 }
  0x98   : > { %v1069_v53 = vrot.slane %v1067_v41, 1 }
  0x99   : > { %1398 = vrot.lane.b32.xlu0 %v1377_v15, %s2461_s14  ;;  %v1014_v15 = vrot.slane %v1012_v36, 1  ;;  %v1022_v61 = vor.u32 %v1021_v48, %v1017_v46  ;;  %v2391_v36 = vld [vmem:[#allocation2 + $0x38] ss:$0 sps:$4 sm:$0x11]  }
  0x9a   : > { %1406 = vrot.lane.b32.xlu1 %v1389_v45, %s2461_s14  ;;  %v619_v45 = vld [vmem:[#allocation2 + $0x24] sm:$0xe]  ;;  %v1070_v23 = vor.u32 %v1069_v53, %v1065_v38  ;;  %v2393_v46 = vld [vmem:[#allocation2 + $0x44] ss:$0 sps:$4 sm:$0x11]  }
  0x9b   : > { %v1015_v60 = vsel %vm722_vm9, %v1010_v13, %v1014_v15  ;;  %v1268_v15 = vshll.u32 %v2391_v36, 16 }
  0x9d   : > { %825 = vrot.lane.b32.xlu0 %v770_v5, %s2455_s29  ;;  %v2144_v5 = vcombine.low %v619_v45, %v2900_v62  ;;  %v1027_v62 = vsel %vm722_vm9, %v1022_v61, %v1026_v25  ;;  %v1316_v45 = vshll.u32 %v2390_v42, 16 }
  0x9e   : > { %833 = vrot.lane.b32.xlu1 %v818_v63, %s2455_s29  ;;  %v2148_v63 = vcombine.low %v623_v56, %v2905_v4  ;;  %v1075_v4 = vsel %vm722_vm9, %v1070_v23, %v1074_v2  ;;  %v1270_v56 = vrot.slane %v1268_v15, 1  ;;  %v656_v23 = vld [vmem:[#allocation2 + $0x60] sm:$0xe]  ;;  %s2462_s29 = smov 120  }
  0x9f   : > { %v1318_v25 = vrot.slane %v1316_v45, 1 }
  0xa0   : > { %v1134_v11 = vrot.slane %v2148_v63, 1 }
  0xa1   : > { %888 = vrot.lane.b32.xlu0 %v868_v51, %s2454_s28  ;;  %v1122_v51 = vrot.slane %v2144_v5, 1 }
  0xa2   : > { %896 = vrot.lane.b32.xlu1 %v880_v50, %s2454_s28  ;;  %v630_v50 = vld [vmem:[#allocation2 + $0x30] sm:$0xf]  ;;  %v1136_v30 = vsel %vm859_vm8, %v1134_v11, %v1135_v14  ;;  %v657_v14 = vld [vmem:[#allocation2 + $0x6c] sm:$0xe] }
  0xa3   : > { %v1124_v22 = vsel %vm859_vm8, %v1122_v51, %v1123_v55  ;;  %v653_v55 = vld [vmem:[#allocation2 + $0x3c] sm:$0xe] }
  0xa5   : > { %890 = vrot.lane.b32.xlu0 %v871_v24, %s2454_s28  ;;  %v2152_v24 = vcombine.low %v630_v50, %v2958_v12 }
  0xa6   : > { %898 = vrot.lane.b32.xlu1 %v883_v29, %s2454_s28  ;;  %v2969_v29 = vld [vmem:[#allocation2 + $0x40] sm:$0xf] }
  0xa7   : > { %v2153_v33 = vcombine.low %v632_v28, %v2969_v29  ;;  %v1263_v35 = vshll.u32 %v2152_v24, 16  ;;  %v1261_v13 = vshrl.u32 %v2152_v24, 16  ;;  %v2169_v50 = vcombine.low %v653_v55, %v2969_v29 }
  0xa8   : > { %v1391_v28 = vrot.slane %v2390_v42, 1 }
  0xa9   : > { %944 = vrot.lane.b32.xlu0 %v2128_v8, %s2456_s30  ;;  %v2145_v8 = vcombine.low %v620_v58, %v2915_v18  ;;  %v2960_v18 = vld [vmem:[#allocation2 + $0x64] sm:$0xf]  ;;  %v1275_v44 = vshll.u32 %v2153_v33, 16  ;;  %v1265_v38 = vrot.slane %v1263_v35, 1  ;;  %v1273_v53 = vshrl.u32 %v2153_v33, 16 }
  0xaa   : > { %952 = vrot.lane.b32.xlu1 %v2132_v7, %s2456_s30  ;;  %v638_v7 = vld [vmem:[#allocation2 + $0x60] sm:$0xf]  ;;  %v1280_v58 = vshll.u32 %v2393_v46, 16  ;;  %v2172_v51 = vcombine.low %v656_v23, %v2960_v18 }
  0xab   : > { %v1125_v19 = vrot.slane %v2145_v8, 1  ;;  %v2156_v31 = vcombine.low %v638_v7, %v2960_v18  ;;  %v1266_v54 = vor.u32 %v1265_v38, %v1261_v13  ;;  %v1277_v5 = vrot.slane %v1275_v44, 1 }
  0xad   : > { %946 = vrot.lane.b32.xlu0 %v2129_v27, %s2456_s30  ;;  %v2967_v27 = vld [vmem:[#allocation2 + $0x70] sm:$0xf]  ;;  %v1127_v34 = vsel %vm859_vm8, %v1125_v19, %v1126_v20  ;;  %v1311_v41 = vshll.u32 %v2156_v31, 16  ;;  %v1309_v48 = vshrl.u32 %v2156_v31, 16  ;;  %v1271_v3 = vsel %vm722_vm9, %v1266_v54, %v1270_v56 }
  0xae   : > { %954 = vrot.lane.b32.xlu1 %v2133_v57, %s2456_s30  ;;  %v1137_v57 = vrot.slane %v2149_v10, 1  ;;  %v2157_v32 = vcombine.low %v640_v26, %v2967_v27  ;;  %v1278_v8 = vor.u32 %v1277_v5, %v1273_v53  ;;  %v1379_v26 = vrot.slane %v2391_v36, 1  ;;  %s2214_s30 = sshll.u32 (%p2537_p5), %s2435_s19, 4 }
  0xaf   : > { %v1313_v49 = vrot.slane %v1311_v41, 1  ;;  %v2173_v18 = vcombine.low %v657_v14, %v2967_v27 }
  0xb0   : > { %v1139_v40 = vsel %vm859_vm8, %v1137_v57, %v1138_v59  ;;  %v1323_v43 = vshll.u32 %v2157_v32, 16  ;;  %v1321_v52 = vshrl.u32 %v2157_v32, 16  ;;  %v1382_v57 = vrot.slane %v2393_v46, 1 }
  0xb1   : > { %1080 = vrot.lane.b32.xlu0 %v1015_v60, %s2457_s6  ;;  %v652_v60 = vld [vmem:[#allocation2 + $0x30] sm:$0xe]  ;;  %v1314_v61 = vor.u32 %v1313_v49, %v1309_v48 }
  0xb2   : > { %1088 = vrot.lane.b32.xlu1 %v1063_v0, %s2457_s6  ;;  %v1325_v63 = vrot.slane %v1323_v43, 1  ;;  %v1328_v0 = vshll.u32 %v2392_v47, 16  ;;  %v2168_v2 = vcombine.low %v652_v60, %v2958_v12 }
  0xb3   : > { %v1319_v10 = vsel %vm722_vm9, %v1314_v61, %v1318_v25 }
  0xb4   : > { %v1330_v11 = vrot.slane %v1328_v0, 1  ;;  %v1378_v20 = vrot.slane %v2168_v2, 1 }
  0xb5   : > { %1082 = vrot.lane.b32.xlu0 %v1027_v62, %s2457_s6  ;;  %v1282_v62 = vrot.slane %v1280_v58, 1 }
  0xb6   : > { %1090 = vrot.lane.b32.xlu1 %v1075_v4, %s2457_s6  ;;  %v1326_v4 = vor.u32 %v1325_v63, %v1321_v52  ;;  %v1380_v29 = vsel %vm859_vm8, %v1378_v20, %v1379_v26  ;;  %s2205_s6 = sshll.u32 (%p2537_p5), %s2439_s20, 6 }
  0xb7   : > { %v1283_v19 = vsel %vm722_vm9, %v1278_v8, %v1282_v62  ;;  %s1850_s27 = sadd.s32 (%p2537_p5), %s2214_s30, %s2205_s6 }
  0xb9   : > { %1144 = vrot.lane.b32.xlu0 %v1124_v22, %s2458_s7  ;;  %v1331_v22 = vsel %vm722_vm9, %v1326_v4, %v1330_v11 }
  0xba   : > { %1152 = vrot.lane.b32.xlu1 %v1136_v30, %s2458_s7  ;;  %v1381_v30 = vrot.slane %v2169_v50, 1 }
  0xbc   : > { %v1383_v27 = vsel %vm859_vm8, %v1381_v30, %v1382_v57 }
  0xbd   : > { %1146 = vrot.lane.b32.xlu0 %v1127_v34, %s2458_s7 }
  0xbe   : > { %1154 = vrot.lane.b32.xlu1 %v1139_v40, %s2458_s7  ;;  %s2206_s7 = sshll.u32 (%p2537_p5), %s1850_s27, 3 }
  0xbf   : > { %s3221_s10 = scalar_lea.vmem (%p2537_p5), %s3303_s4, %s2206_s7 }
  0xc1   : > { %1200 = vrot.lane.b32.xlu0 %v2152_v24, %s2459_s8  ;;  %v1390_v24 = vrot.slane %v2172_v51, 1 }
  0xc2   : > { %1208 = vrot.lane.b32.xlu1 %v2156_v31, %s2459_s8 }
  0xc3   : > { %v1392_v31 = vsel %vm859_vm8, %v1390_v24, %v1391_v28 }
  0xc5   : > { %1202 = vrot.lane.b32.xlu0 %v2153_v33, %s2459_s8  ;;  %v1394_v33 = vrot.slane %v2392_v47, 1 }
  0xc6   : > { %1210 = vrot.lane.b32.xlu1 %v2157_v32, %s2459_s8  ;;  %v1393_v32 = vrot.slane %v2173_v18, 1 }
  0xc8   : > { %v893_v12 = vpop.permute.xlu1 %892  ;;  %v1395_v36 = vsel %vm859_vm8, %v1393_v32, %v1394_v33 }
  0xc9   : > { %1336 = vrot.lane.b32.xlu0 %v1271_v3, %s2460_s13 }
  0xca   : > { %1344 = vrot.lane.b32.xlu1 %v1319_v10, %s2460_s13  ;;  %v885_v7 = vpop.permute.xlu0 %884 }
  0xcd   : > { %1338 = vrot.lane.b32.xlu0 %v1283_v19, %s2460_s13 }
  0xce   : > { %1346 = vrot.lane.b32.xlu1 %v1331_v22, %s2460_s13 }
  0xcf   : > { %v820_v59 = vpop.permute.xlu0 %819 }
  0xd0   : > { %v822_v34 = vpop.permute.xlu1 %821  ;;  %v1414_v60 = vsel %vm1412_vm11, %v2709_v16, %v820_v59 }
  0xd1   : > { %1400 = vrot.lane.b32.xlu0 %v1380_v29, %s2461_s14  ;;  %v1431_v0 = vsel %vm1429_vm12, %v1414_v60, %v885_v7  ;;  %v1416_v4 = vsel %vm1412_vm11, %v2715_v6, %v822_v34 }
  0xd2   : > { %1408 = vrot.lane.b32.xlu1 %v1392_v31, %s2461_s14 }
  0xd3   : > { %v828_v35 = vpop.permute.xlu0 %827 }
  0xd4   : > { %v830_v40 = vpop.permute.xlu1 %829  ;;  %v1422_v25 = vsel %vm1412_vm11, %v2712_v1, %v828_v35 }
  0xd5   : > { %1402 = vrot.lane.b32.xlu0 %v1383_v27, %s2461_s14  ;;  %v1439_v23 = vsel %vm1429_vm12, %v1422_v25, %v893_v12  ;;  %v1424_v12 = vsel %vm1412_vm11, %v2723_v21, %v830_v40 }
  0xd6   : > { %1410 = vrot.lane.b32.xlu1 %v1395_v36, %s2461_s14 }
  0xd7   : > { %v887_v41 = vpop.permute.xlu0 %886 }
  0xd8   : > { %v895_v42 = vpop.permute.xlu1 %894  ;;  %v1433_v18 = vsel %vm1429_vm12, %v1416_v4, %v887_v41 }
  0xd9   : > { %v1441_v6 = vsel %vm1429_vm12, %v1424_v12, %v895_v42 }
  0xdb   : > { %v941_v43 = vpop.permute.xlu0 %940 }
  0xdc   : > { %v949_v44 = vpop.permute.xlu1 %948  ;;  %v1448_v2 = vsel %vm1446_vm13, %v1431_v0, %v941_v43 }
  0xdd   : > { %v1456_v8 = vsel %vm1446_vm13, %v1439_v23, %v949_v44 }
  0xdf   : > { %v943_v13 = vpop.permute.xlu0 %942 }
  0xe0   : > { %v951_v38 = vpop.permute.xlu1 %950  ;;  %v1450_v22 = vsel %vm1446_vm13, %v1433_v18, %v943_v13 }
  0xe1   : > { %v1458_v21 = vsel %vm1446_vm13, %v1441_v6, %v951_v38 }
  0xe3   : > { %v1077_v15 = vpop.permute.xlu0 %1076 }
  0xe4   : > { %v1085_v46 = vpop.permute.xlu1 %1084  ;;  %v1465_v16 = vsel %vm1463_vm14, %v1448_v2, %v1077_v15 }
  0xe5   : > { %v1473_v1 = vsel %vm1463_vm14, %v1456_v8, %v1085_v46 }
  0xe7   : > { %v1079_v48 = vpop.permute.xlu0 %1078 }
  0xe8   : > { %v1087_v49 = vpop.permute.xlu1 %1086  ;;  %v1467_v28 = vsel %vm1463_vm14, %v1450_v22, %v1079_v48 }
  0xe9   : > { %v1475_v30 = vsel %vm1463_vm14, %v1458_v21, %v1087_v49 }
  0xeb   : > { %v1141_v45 = vpop.permute.xlu0 %1140 }
  0xec   : > { %v1149_v47 = vpop.permute.xlu1 %1148  ;;  %v1482_v51 = vsel %vm1480_vm15, %v1465_v16, %v1141_v45 }
  0xed   : > { %v1490_v55 = vsel %vm1480_vm15, %v1473_v1, %v1149_v47 }
  0xef   : > { %v1143_v52 = vpop.permute.xlu0 %1142 }
  0xf0   : > { %v1151_v53 = vpop.permute.xlu1 %1150  ;;  %v1484_v57 = vsel %vm1480_vm15, %v1467_v28, %v1143_v52 }
  0xf1   : > { %v1492_v59 = vsel %vm1480_vm15, %v1475_v30, %v1151_v53 }
  0xf3   : > { %v1197_v54 = vpop.permute.xlu0 %1196 }
  0xf4   : > { %v1205_v56 = vpop.permute.xlu1 %1204  ;;  %v1499_v10 = vsel %vm1497_vm0, %v1482_v51, %v1197_v54 }
  0xf5   : > { %v1507_v11 = vsel %vm1497_vm0, %v1490_v55, %v1205_v56 }
  0xf7   : > { %v1199_v5 = vpop.permute.xlu0 %1198 }
  0xf8   : > { %v1207_v58 = vpop.permute.xlu1 %1206  ;;  %v1501_v31 = vsel %vm1497_vm0, %v1484_v57, %v1199_v5 }
  0xf9   : > { %v1509_v32 = vsel %vm1497_vm0, %v1492_v59, %v1207_v58 }
  0xfb   : > { %v1333_v61 = vpop.permute.xlu0 %1332 }
  0xfc   : > { %v1341_v63 = vpop.permute.xlu1 %1340  ;;  %v1516_v14 = vsel %vm1514_vm1, %v1499_v10, %v1333_v61 }
  0xfd   : > { %v1524_v7 = vsel %vm1514_vm1, %v1507_v11, %v1341_v63 }
  0xff   : > { %v1335_v3 = vpop.permute.xlu0 %1334 }
 0x100   : > { %v1343_v62 = vpop.permute.xlu1 %1342  ;;  %v1518_v33 = vsel %vm1514_vm1, %v1501_v31, %v1335_v3 }
 0x101   : > { %v1526_v27 = vsel %vm1514_vm1, %v1509_v32, %v1343_v62 }
 0x103   : > { %v1397_v50 = vpop.permute.xlu0 %1396 }
 0x104   : > { %v1405_v19 = vpop.permute.xlu1 %1404  ;;  %v1533_v20 = vsel %vm1531_vm2, %v1516_v14, %v1397_v50 }
 0x105   : > { %2232 = vmatprep.mubr.msk.bf16.mxu0 %vm1575_vm3, %v1533_v20  ;;  %v1541_v26 = vsel %vm1531_vm2, %v1524_v7, %v1405_v19 }
 0x106   : > { %2240 = vmatprep.mubr.msk.bf16.mxu1 %vm1575_vm3, %v1541_v26 }
 0x107   : > { %v824_v24 = vpop.permute.xlu0 %823 }
 0x108   : > { %v832_v29 = vpop.permute.xlu1 %831  ;;  %v1418_v2 = vsel %vm1412_vm11, %v2830_v39, %v824_v24 }
 0x109   : > { %v1426_v3 = vsel %vm1412_vm11, %v2827_v37, %v832_v29 }
 0x10b   : > { %v1399_v34 = vpop.permute.xlu0 %1398 }
 0x10c   : > { %v1407_v35 = vpop.permute.xlu1 %1406  ;;  %v1535_v36 = vsel %vm1531_vm2, %v1518_v33, %v1399_v34 }
 0x10d   : > { %v1543_v40 = vsel %vm1531_vm2, %v1526_v27, %v1407_v35  ;;  %2233 = vmatmul.mubr.msk.bf16.vlgmr.msra.gmra.mrb[0].mxu0 %vm1575_vm3, %v1535_v36  ;;  %v3089_v36 = vld [vmem:[%s3301_s2] ss:$0 sm:$0xff] }
 0x10e   : > { %2241 = vmatmul.mubr.msk.bf16.vlgmr.msra.gmra.mrb[0].mxu1 %vm1575_vm3, %v1543_v40 }
 0x10f   : > { %v826_v41 = vpop.permute.xlu0 %825 }
 0x110   : > { %v834_v42 = vpop.permute.xlu1 %833  ;;  %v1420_v39 = vsel %vm1412_vm11, %v2860_v9, %v826_v41  ;;  %v3091_v41 = vstv %s1693_s25 }
 0x111   : > { %v1428_v51 = vsel %vm1412_vm11, %v2865_v17, %v834_v42 }
 0x113   : > { %v889_v43 = vpop.permute.xlu0 %888 }
 0x114   : > { %v897_v44 = vpop.permute.xlu1 %896  ;;  %v1435_v8 = vsel %vm1429_vm12, %v1418_v2, %v889_v43 }
 0x115   : > { %v1443_v16 = vsel %vm1429_vm12, %v1426_v3, %v897_v44 }
 0x117   : > { %v891_v13 = vpop.permute.xlu0 %890 }
 0x118   : > { %v899_v38 = vpop.permute.xlu1 %898  ;;  %v1437_v14 = vsel %vm1429_vm12, %v1420_v39, %v891_v13 }
 0x119   : > { %v1445_v17 = vsel %vm1429_vm12, %v1428_v51, %v899_v38 }
 0x11b   : > { %v945_v15 = vpop.permute.xlu0 %944 }
 0x11c   : > { %v953_v46 = vpop.permute.xlu1 %952  ;;  %v1452_v62 = vsel %vm1446_vm13, %v1435_v8, %v945_v15 }
 0x11d   : > { %v1460_v55 = vsel %vm1446_vm13, %v1443_v16, %v953_v46 }
 0x11f   : > { %v947_v48 = vpop.permute.xlu0 %946 }
 0x120   : > { %v955_v49 = vpop.permute.xlu1 %954  ;;  %v1454_v7 = vsel %vm1446_vm13, %v1437_v14, %v947_v48 }
 0x121   : > { %v1462_v9 = vsel %vm1446_vm13, %v1445_v17, %v955_v49 }
 0x123   : > { %v1081_v45 = vpop.permute.xlu0 %1080 }
 0x124   : > { %v1089_v47 = vpop.permute.xlu1 %1088  ;;  %v1469_v10 = vsel %vm1463_vm14, %v1452_v62, %v1081_v45 }
 0x125   : > { %v1477_v37 = vsel %vm1463_vm14, %v1460_v55, %v1089_v47 }
 0x127   : > { %v1083_v52 = vpop.permute.xlu0 %1082 }
 0x128   : > { %v1091_v53 = vpop.permute.xlu1 %1090  ;;  %v1471_v18 = vsel %vm1463_vm14, %v1454_v7, %v1083_v52 }
 0x129   : > { %v1479_v21 = vsel %vm1463_vm14, %v1462_v9, %v1091_v53 }
 0x12b   : > { %v1145_v54 = vpop.permute.xlu0 %1144 }
 0x12c   : > { %v1153_v56 = vpop.permute.xlu1 %1152  ;;  %v1486_v11 = vsel %vm1480_vm15, %v1469_v10, %v1145_v54 }
 0x12d   : > { %v1494_v50 = vsel %vm1480_vm15, %v1477_v37, %v1153_v56 }
 0x12f   : > { %v1147_v5 = vpop.permute.xlu0 %1146 }
 0x130   : > { %v1155_v58 = vpop.permute.xlu1 %1154  ;;  %v1488_v28 = vsel %vm1480_vm15, %v1471_v18, %v1147_v5 }
 0x131   : > { %v1496_v30 = vsel %vm1480_vm15, %v1479_v21, %v1155_v58 }
 0x133   : > { %v1201_v60 = vpop.permute.xlu0 %1200 }
 0x134   : > { %v1209_v61 = vpop.permute.xlu1 %1208  ;;  %v1503_v12 = vsel %vm1497_vm0, %v1486_v11, %v1201_v60 }
 0x135   : > { %v1511_v19 = vsel %vm1497_vm0, %v1494_v50, %v1209_v61 }
 0x137   : > { %v1203_v25 = vpop.permute.xlu0 %1202 }
 0x138   : > { %v1211_v63 = vpop.permute.xlu1 %1210  ;;  %v1505_v57 = vsel %vm1497_vm0, %v1488_v28, %v1203_v25 }
 0x139   : > { %v1513_v59 = vsel %vm1497_vm0, %v1496_v30, %v1211_v63 }
 0x13b   : > { %v1337_v0 = vpop.permute.xlu0 %1336 }
 0x13c   : > { %v1345_v23 = vpop.permute.xlu1 %1344  ;;  %v1520_v20 = vsel %vm1514_vm1, %v1503_v12, %v1337_v0 }
 0x13d   : > { %v1528_v6 = vsel %vm1514_vm1, %v1511_v19, %v1345_v23 }
 0x13f   : > { %v1339_v1 = vpop.permute.xlu0 %1338 }
 0x140   : > { %v1347_v4 = vpop.permute.xlu1 %1346  ;;  %v1522_v31 = vsel %vm1514_vm1, %v1505_v57, %v1339_v1 }
 0x141   : > { %v1530_v33 = vsel %vm1514_vm1, %v1513_v59, %v1347_v4 }
 0x143   : > { %v1401_v26 = vpop.permute.xlu0 %1400 }
 0x144   : > { %v1409_v22 = vpop.permute.xlu1 %1408  ;;  %v1537_v24 = vsel %vm1531_vm2, %v1520_v20, %v1401_v26 }
 0x145   : > { %v1545_v29 = vsel %vm1531_vm2, %v1528_v6, %v1409_v22  ;;  %2236 = vmatprep.mubr.msk.bf16.mxu0 %vm1575_vm3, %v1537_v24 }
 0x146   : > { %2244 = vmatprep.mubr.msk.bf16.mxu1 %vm1575_vm3, %v1545_v29 }
 0x147   : > { %v1403_v32 = vpop.permute.xlu0 %1402 }
 0x148   : > { %v1411_v34 = vpop.permute.xlu1 %1410  ;;  %v1539_v27 = vsel %vm1531_vm2, %v1522_v31, %v1403_v32 }
 0x149   : > { %v1547_v35 = vsel %vm1531_vm2, %v1530_v33, %v1411_v34  ;;  %2237 = vmatmul.mubr.msk.bf16.gmra.mrb[4].mxu0 %vm1575_vm3, %v1539_v27 }
 0x14a   : > { %2245 = vmatmul.mubr.msk.bf16.gmra.mrb[4].mxu1 %vm1575_vm3, %v1547_v35 }
 0x1e0   : > { %v2234_v40 = vpop.f32.mrb[0].mxu0 }
 0x1e1   : > { %v1639_v42 = vadd.f32 %v2234_v40, %v3089_v36  ;;  %v2242_v43 = vpop.f32.mrb[0].mxu1  ;;  %v1630_v44 = vpop.f32.mrb[1].mxu0 }
 0x1e2   : > { %v1671_v13 = vadd.f32 %v2242_v43, %v3089_v36  ;;  %v1631_v38 = vadd.f32 %v3089_v36, %v1630_v44  ;;  %v1662_v15 = vpop.f32.mrb[1].mxu1  ;;  %v2235_v46 = vpop.f32.mrb[2].mxu0 }
 0x1e3   : > { %v1713_v48 = vmul.f32 %v3091_v41, %v1639_v42  ;;  %v1663_v49 = vadd.f32 %v3089_v36, %v1662_v15  ;;  %v1642_v45 = vadd.f32 %v2235_v46, %v3089_v36  ;;  %v2243_v47 = vpop.f32.mrb[2].mxu1  ;;  %v1633_v52 = vpop.f32.mrb[3].mxu0  ;;  %vm1696_vm4 = vcmp.ge.f32.partialorder %v1639_v42, 0.0 }
 0x1e4   : > { %v1721_v53 = vmul.f32 %v3091_v41, %v1671_v13  ;;  %v1711_v54 = vmul.f32 %v3091_v41, %v1631_v38  ;;  %v1674_v56 = vadd.f32 %v2243_v47, %v3089_v36  ;;  %v1634_v5 = vadd.f32 %v3089_v36, %v1633_v52  ;;  %v1665_v58 = vpop.f32.mrb[3].mxu1 }
 0x1e5   : > { %v1719_v60 = vmul.f32 %v3091_v41, %v1663_v49  ;;  %v1714_v61 = vmul.f32 %v3091_v41, %v1642_v45  ;;  %v1666_v25 = vadd.f32 %v3089_v36, %v1665_v58  ;;  %v1729_v63 = vsel %vm1696_vm4, %v1639_v42, %v1713_v48 }
 0x1e6   : > { %v1722_v0 = vmul.f32 %v3091_v41, %v1674_v56  ;;  %v1712_v23 = vmul.f32 %v3091_v41, %v1634_v5  ;;  %1779 = vrot.lane.b32.xlu0 %v1729_v63, %s2462_s29  ;;  %1745 = vst.msk [vmem:[%s2686_s16 + $0x10] sm:$0xff] %vm1429_vm12, %v1729_v63  ;;  %vm1697_vm5 = vcmp.ge.f32.partialorder %v1642_v45, 0.0  ;;  %vm1704_vm6 = vcmp.ge.f32.partialorder %v1671_v13, 0.0 }
 0x1e7   : > { %v1720_v2 = vmul.f32 %v3091_v41, %v1666_v25  ;;  %v1730_v3 = vsel %vm1697_vm5, %v1642_v45, %v1714_v61  ;;  %v1737_v8 = vsel %vm1704_vm6, %v1671_v13, %v1721_v53  ;;  %vm1705_vm7 = vcmp.ge.f32.partialorder %v1674_v56, 0.0 }
 0x1e8   : > { %1781 = vrot.lane.b32.xlu1 %v1730_v3, %s2462_s29  ;;  %1746 = vst.msk [vmem:[%s2686_s16 + $0x18] sm:$0xff] %vm1429_vm12, %v1730_v3  ;;  %1753 = vst.msk [vmem:[%s2686_s16 + $0x50] sm:$0xff] %vm1429_vm12, %v1737_v8  ;;  %v1738_v16 = vsel %vm1705_vm7, %v1674_v56, %v1722_v0  ;;  %vm1694_vm8 = vcmp.ge.f32.partialorder %v1631_v38, 0.0  ;;  %vm1695_vm9 = vcmp.ge.f32.partialorder %v1634_v5, 0.0  ;;  %vm1702_vm10 = vcmp.ge.f32.partialorder %v1663_v49, 0.0 }
 0x1e9   : > { %1754 = vst.msk [vmem:[%s2686_s16 + $0x58] sm:$0xff] %vm1429_vm12, %v1738_v16  ;;  %v1727_v62 = vsel %vm1694_vm8, %v1631_v38, %v1711_v54  ;;  %v1728_v1 = vsel %vm1695_vm9, %v1634_v5, %v1712_v23  ;;  %v1735_v51 = vsel %vm1702_vm10, %v1663_v49, %v1719_v60  ;;  %vm1703_vm11 = vcmp.ge.f32.partialorder %v1666_v25, 0.0 }
 0x1ea   : > { %1795 = vrot.lane.b32.xlu0 %v1737_v8, %s2462_s29  ;;  %1743 = vst.msk [vmem:[%s2686_s16] sm:$0xff] %vm1429_vm12, %v1727_v62  ;;  %1744 = vst.msk [vmem:[%s2686_s16 + $0x8] sm:$0xff] %vm1429_vm12, %v1728_v1  ;;  %v1736_v55 = vsel %vm1703_vm11, %v1666_v25, %v1720_v2 }
 0x1eb   : > { %1751 = vst.msk [vmem:[%s2686_s16 + $0x40] sm:$0xff] %vm1429_vm12, %v1735_v51  ;;  %1752 = vst.msk [vmem:[%s2686_s16 + $0x48] sm:$0xff] %vm1429_vm12, %v1736_v55 }
 0x1ec   : > { %1797 = vrot.lane.b32.xlu1 %v1738_v16, %s2462_s29 }
 0x1ed   : > { %v1946_v60 = vld [vmem:[%s2686_s16 + $0x10] sm:$0xff] (%p2537_p5) }
 0x1ee   : > { %1775 = vrot.lane.b32.xlu0 %v1727_v62, %s2462_s29  ;;  %1947 = vst [vmem:[%s3221_s10 + $0x10] sm:$0xff] (%p2537_p5), %v1946_v60 }
 0x1ef   : > { %v1948_v61 = vld [vmem:[%s2686_s16 + $0x18] sm:$0xff] (%p2537_p5)  ;;  %v1962_v8 = vld [vmem:[%s2686_s16 + $0x50] sm:$0xff] (%p2537_p5) }
 0x1f0   : > { %1777 = vrot.lane.b32.xlu1 %v1728_v1, %s2462_s29  ;;  %v1964_v16 = vld [vmem:[%s2686_s16 + $0x58] sm:$0xff] (%p2537_p5)  ;;  %1949 = vst [vmem:[%s3221_s10 + $0x18] sm:$0xff] (%p2537_p5), %v1948_v61  ;;  %1963 = vst [vmem:[%s3221_s10 + $0x50] sm:$0xff] (%p2537_p5), %v1962_v8 }
 0x1f1   : > { %v1942_v5 = vld [vmem:[%s2686_s16] sm:$0xff] (%p2537_p5)  ;;  %v1944_v58 = vld [vmem:[%s2686_s16 + $0x8] sm:$0xff] (%p2537_p5)  ;;  %1965 = vst [vmem:[%s3221_s10 + $0x58] sm:$0xff] (%p2537_p5), %v1964_v16 }
 0x1f2   : > { %1791 = vrot.lane.b32.xlu0 %v1735_v51, %s2462_s29  ;;  %v1958_v2 = vld [vmem:[%s2686_s16 + $0x40] sm:$0xff] (%p2537_p5)  ;;  %v1960_v3 = vld [vmem:[%s2686_s16 + $0x48] sm:$0xff] (%p2537_p5)  ;;  %1943 = vst [vmem:[%s3221_s10] sm:$0xff] (%p2537_p5), %v1942_v5 }
 0x1f3   : > { %1945 = vst [vmem:[%s3221_s10 + $0x8] sm:$0xff] (%p2537_p5), %v1944_v58  ;;  %1959 = vst [vmem:[%s3221_s10 + $0x40] sm:$0xff] (%p2537_p5), %v1958_v2 }
 0x1f4   : > { %1793 = vrot.lane.b32.xlu1 %v1736_v55, %s2462_s29  ;;  %1961 = vst [vmem:[%s3221_s10 + $0x48] sm:$0xff] (%p2537_p5), %v1960_v3 }
 0x21c   : > { %v2238_v10 = vpop.f32.mrb[4].mxu0 }
 0x21d   : > { %v1655_v4 = vadd.f32 %v2238_v10, %v3089_v36  ;;  %v2246_v39 = vpop.f32.mrb[4].mxu1  ;;  %v1646_v37 = vpop.f32.mrb[5].mxu0 }
 0x21e   : > { %v1687_v11 = vadd.f32 %v2246_v39, %v3089_v36  ;;  %v1647_v14 = vadd.f32 %v3089_v36, %v1646_v37  ;;  %v1678_v50 = vpop.f32.mrb[5].mxu1  ;;  %v2239_v12 = vpop.f32.mrb[6].mxu0 }
 0x21f   : > { %v1717_v17 = vmul.f32 %v3091_v41, %v1655_v4  ;;  %v1679_v7 = vadd.f32 %v3089_v36, %v1678_v50  ;;  %v1658_v19 = vadd.f32 %v2239_v12, %v3089_v36  ;;  %v2247_v20 = vpop.f32.mrb[6].mxu1  ;;  %v1649_v26 = vpop.f32.mrb[7].mxu0  ;;  %vm1700_vm13 = vcmp.ge.f32.partialorder %v1655_v4, 0.0 }
 0x220   : > { %v1725_v9 = vmul.f32 %v3091_v41, %v1687_v11  ;;  %v1715_v18 = vmul.f32 %v3091_v41, %v1647_v14  ;;  %v1690_v6 = vadd.f32 %v2247_v20, %v3089_v36  ;;  %v1650_v22 = vadd.f32 %v3089_v36, %v1649_v26  ;;  %v1681_v24 = vpop.f32.mrb[7].mxu1 }
 0x221   : > { %v1723_v21 = vmul.f32 %v3091_v41, %v1679_v7  ;;  %v1718_v28 = vmul.f32 %v3091_v41, %v1658_v19  ;;  %v1682_v29 = vadd.f32 %v3089_v36, %v1681_v24  ;;  %v1733_v30 = vsel %vm1700_vm13, %v1655_v4, %v1717_v17 }
 0x222   : > { %v1726_v57 = vmul.f32 %v3091_v41, %v1690_v6  ;;  %v1716_v59 = vmul.f32 %v3091_v41, %v1650_v22  ;;  %1787 = vrot.lane.b32.xlu0 %v1733_v30, %s2462_s29  ;;  %1749 = vst.msk [vmem:[%s2686_s16 + $0x30] sm:$0xff] %vm1429_vm12, %v1733_v30  ;;  %vm1701_vm14 = vcmp.ge.f32.partialorder %v1658_v19, 0.0  ;;  %vm1698_vm15 = vcmp.ge.f32.partialorder %v1647_v14, 0.0 }
 0x223   : > { %v1724_v31 = vmul.f32 %v3091_v41, %v1682_v29  ;;  %v1734_v32 = vsel %vm1701_vm14, %v1658_v19, %v1718_v28  ;;  %v1731_v33 = vsel %vm1698_vm15, %v1647_v14, %v1715_v18  ;;  %vm1699_vm0 = vcmp.ge.f32.partialorder %v1650_v22, 0.0 }
 0x224   : > { %1789 = vrot.lane.b32.xlu1 %v1734_v32, %s2462_s29  ;;  %1750 = vst.msk [vmem:[%s2686_s16 + $0x38] sm:$0xff] %vm1429_vm12, %v1734_v32  ;;  %1747 = vst.msk [vmem:[%s2686_s16 + $0x20] sm:$0xff] %vm1429_vm12, %v1731_v33  ;;  %v1732_v34 = vsel %vm1699_vm0, %v1650_v22, %v1716_v59  ;;  %vm1706_vm1 = vcmp.ge.f32.partialorder %v1679_v7, 0.0  ;;  %vm1707_vm2 = vcmp.ge.f32.partialorder %v1682_v29, 0.0  ;;  %vm1708_vm3 = vcmp.ge.f32.partialorder %v1687_v11, 0.0 }
 0x225   : > { %1748 = vst.msk [vmem:[%s2686_s16 + $0x28] sm:$0xff] %vm1429_vm12, %v1732_v34  ;;  %v1739_v27 = vsel %vm1706_vm1, %v1679_v7, %v1723_v21  ;;  %v1740_v35 = vsel %vm1707_vm2, %v1682_v29, %v1724_v31  ;;  %v1741_v36 = vsel %vm1708_vm3, %v1687_v11, %v1725_v9  ;;  %vm1709_vm4 = vcmp.ge.f32.partialorder %v1690_v6, 0.0 }
 0x226   : > { %1783 = vrot.lane.b32.xlu0 %v1731_v33, %s2462_s29  ;;  %1755 = vst.msk [vmem:[%s2686_s16 + $0x60] sm:$0xff] %vm1429_vm12, %v1739_v27  ;;  %1756 = vst.msk [vmem:[%s2686_s16 + $0x68] sm:$0xff] %vm1429_vm12, %v1740_v35  ;;  %v1742_v40 = vsel %vm1709_vm4, %v1690_v6, %v1726_v57 }
 0x227   : > { %1757 = vst.msk [vmem:[%s2686_s16 + $0x70] sm:$0xff] %vm1429_vm12, %v1741_v36  ;;  %1758 = vst.msk [vmem:[%s2686_s16 + $0x78] sm:$0xff] %vm1429_vm12, %v1742_v40 }
 0x228   : > { %1785 = vrot.lane.b32.xlu1 %v1732_v34, %s2462_s29 }
 0x229   : > { %v1954_v0 = vld [vmem:[%s2686_s16 + $0x30] sm:$0xff] (%p2537_p5) }
 0x22a   : > { %1799 = vrot.lane.b32.xlu0 %v1739_v27, %s2462_s29  ;;  %1955 = vst [vmem:[%s3221_s10 + $0x30] sm:$0xff] (%p2537_p5), %v1954_v0 }
 0x22b   : > { %v1950_v25 = vld [vmem:[%s2686_s16 + $0x20] sm:$0xff] (%p2537_p5)  ;;  %v1956_v23 = vld [vmem:[%s2686_s16 + $0x38] sm:$0xff] (%p2537_p5) }
 0x22c   : > { %1801 = vrot.lane.b32.xlu1 %v1740_v35, %s2462_s29  ;;  %v1952_v63 = vld [vmem:[%s2686_s16 + $0x28] sm:$0xff] (%p2537_p5)  ;;  %1951 = vst [vmem:[%s3221_s10 + $0x20] sm:$0xff] (%p2537_p5), %v1950_v25  ;;  %1957 = vst [vmem:[%s3221_s10 + $0x38] sm:$0xff] (%p2537_p5), %v1956_v23 }
 0x22d   : > { %1953 = vst [vmem:[%s3221_s10 + $0x28] sm:$0xff] (%p2537_p5), %v1952_v63  ;;  %v1966_v62 = vld [vmem:[%s2686_s16 + $0x60] sm:$0xff] (%p2537_p5)  ;;  %v1968_v1 = vld [vmem:[%s2686_s16 + $0x68] sm:$0xff] (%p2537_p5) }
 0x22e   : > { %1803 = vrot.lane.b32.xlu0 %v1741_v36, %s2462_s29  ;;  %v1970_v51 = vld [vmem:[%s2686_s16 + $0x70] sm:$0xff] (%p2537_p5)  ;;  %1967 = vst [vmem:[%s3221_s10 + $0x60] sm:$0xff] (%p2537_p5), %v1966_v62  ;;  %1969 = vst [vmem:[%s3221_s10 + $0x68] sm:$0xff] (%p2537_p5), %v1968_v1 }
 0x22f   : > { %1971 = vst [vmem:[%s3221_s10 + $0x70] sm:$0xff] (%p2537_p5), %v1970_v51  ;;  %v1972_v55 = vld [vmem:[%s2686_s16 + $0x78] sm:$0xff] (%p2537_p5) }
 0x230   : > { %1805 = vrot.lane.b32.xlu1 %v1742_v40, %s2462_s29  ;;  %1973 = vst [vmem:[%s3221_s10 + $0x78] sm:$0xff] (%p2537_p5), %v1972_v55 }
 0x258   : > { %v1780_v41 = vpop.permute.xlu0 %1779 }
 0x259   : > { %2188 = vst.msk [vmem:[%s2686_s16 + $0x90] sm:$0xff] %vm1429_vm12, %v1780_v41 }
 0x25a   : > { %v1782_v42 = vpop.permute.xlu1 %1781 }
 0x25b   : > { %2189 = vst.msk [vmem:[%s2686_s16 + $0x98] sm:$0xff] %vm1429_vm12, %v1782_v42 }
 0x25c   : > { %v1796_v43 = vpop.permute.xlu0 %1795 }
 0x25d   : > { %2196 = vst.msk [vmem:[%s2686_s16 + $0xd0] sm:$0xff] %vm1429_vm12, %v1796_v43 }
 0x25e   : > { %v1798_v44 = vpop.permute.xlu1 %1797 }
 0x25f   : > { %2197 = vst.msk [vmem:[%s2686_s16 + $0xd8] sm:$0xff] %vm1429_vm12, %v1798_v44 }
 0x260   : > { %v1776_v13 = vpop.permute.xlu0 %1775  ;;  %v1978_v39 = vld [vmem:[%s2686_s16 + $0x90] sm:$0xff] (%p2537_p5) }
 0x261   : > { %2186 = vst.msk [vmem:[%s2686_s16 + $0x80] sm:$0xff] %vm1429_vm12, %v1776_v13  ;;  %1979 = vst [vmem:[%s3221_s10 + $0x110] sm:$0xff] (%p2537_p5), %v1978_v39 }
 0x262   : > { %v1778_v38 = vpop.permute.xlu1 %1777  ;;  %v1980_v37 = vld [vmem:[%s2686_s16 + $0x98] sm:$0xff] (%p2537_p5) }
 0x263   : > { %2187 = vst.msk [vmem:[%s2686_s16 + $0x88] sm:$0xff] %vm1429_vm12, %v1778_v38  ;;  %1981 = vst [vmem:[%s3221_s10 + $0x118] sm:$0xff] (%p2537_p5), %v1980_v37 }
 0x264   : > { %v1792_v15 = vpop.permute.xlu0 %1791  ;;  %v1994_v19 = vld [vmem:[%s2686_s16 + $0xd0] sm:$0xff] (%p2537_p5) }
 0x265   : > { %2194 = vst.msk [vmem:[%s2686_s16 + $0xc0] sm:$0xff] %vm1429_vm12, %v1792_v15  ;;  %1995 = vst [vmem:[%s3221_s10 + $0x150] sm:$0xff] (%p2537_p5), %v1994_v19 }
 0x266   : > { %v1794_v46 = vpop.permute.xlu1 %1793  ;;  %v1996_v20 = vld [vmem:[%s2686_s16 + $0xd8] sm:$0xff] (%p2537_p5) }
 0x267   : > { %2195 = vst.msk [vmem:[%s2686_s16 + $0xc8] sm:$0xff] %vm1429_vm12, %v1794_v46  ;;  %1997 = vst [vmem:[%s3221_s10 + $0x158] sm:$0xff] (%p2537_p5), %v1996_v20 }
 0x268   : > { %v1974_v10 = vld [vmem:[%s2686_s16 + $0x80] sm:$0xff] (%p2537_p5) }
 0x269   : > { %1975 = vst [vmem:[%s3221_s10 + $0x100] sm:$0xff] (%p2537_p5), %v1974_v10 }
 0x26a   : > { %v1976_v4 = vld [vmem:[%s2686_s16 + $0x88] sm:$0xff] (%p2537_p5) }
 0x26b   : > { %1977 = vst [vmem:[%s3221_s10 + $0x108] sm:$0xff] (%p2537_p5), %v1976_v4 }
 0x26c   : > { %v1990_v17 = vld [vmem:[%s2686_s16 + $0xc0] sm:$0xff] (%p2537_p5) }
 0x26d   : > { %1991 = vst [vmem:[%s3221_s10 + $0x140] sm:$0xff] (%p2537_p5), %v1990_v17 }
 0x26e   : > { %v1992_v7 = vld [vmem:[%s2686_s16 + $0xc8] sm:$0xff] (%p2537_p5) }
 0x26f   : > { %1993 = vst [vmem:[%s3221_s10 + $0x148] sm:$0xff] (%p2537_p5), %v1992_v7 }
 0x294   : > { %v1788_v48 = vpop.permute.xlu0 %1787 }
 0x295   : > { %2192 = vst.msk [vmem:[%s2686_s16 + $0xb0] sm:$0xff] %vm1429_vm12, %v1788_v48 }
 0x296   : > { %v1790_v49 = vpop.permute.xlu1 %1789 }
 0x297   : > { %2193 = vst.msk [vmem:[%s2686_s16 + $0xb8] sm:$0xff] %vm1429_vm12, %v1790_v49 }
 0x298   : > { %v1784_v45 = vpop.permute.xlu0 %1783 }
 0x299   : > { %2190 = vst.msk [vmem:[%s2686_s16 + $0xa0] sm:$0xff] %vm1429_vm12, %v1784_v45 }
 0x29a   : > { %v1786_v47 = vpop.permute.xlu1 %1785 }
 0x29b   : > { %2191 = vst.msk [vmem:[%s2686_s16 + $0xa8] sm:$0xff] %vm1429_vm12, %v1786_v47 }
 0x29c   : > { %v1800_v52 = vpop.permute.xlu0 %1799  ;;  %v1986_v50 = vld [vmem:[%s2686_s16 + $0xb0] sm:$0xff] (%p2537_p5) }
 0x29d   : > { %2198 = vst.msk [vmem:[%s2686_s16 + $0xe0] sm:$0xff] %vm1429_vm12, %v1800_v52  ;;  %1846 = sbr.rel (!%p2537_p5) target bundleno = 684 (0x2ac), region = 48  ;;  %1987 = vst [vmem:[%s3221_s10 + $0x130] sm:$0xff] (%p2537_p5), %v1986_v50 }
 0x29e   : > { %v1802_v53 = vpop.permute.xlu1 %1801  ;;  %v1988_v12 = vld [vmem:[%s2686_s16 + $0xb8] sm:$0xff] (%p2537_p5) }
 0x29f   : > { %2199 = vst.msk [vmem:[%s2686_s16 + $0xe8] sm:$0xff] %vm1429_vm12, %v1802_v53  ;;  %1989 = vst [vmem:[%s3221_s10 + $0x138] sm:$0xff] (%p2537_p5), %v1988_v12 }
 0x2a0   : > { %v1804_v54 = vpop.permute.xlu0 %1803  ;;  %v1982_v11 = vld [vmem:[%s2686_s16 + $0xa0] sm:$0xff] (%p2537_p5) }
 0x2a1   : > { %2200 = vst.msk [vmem:[%s2686_s16 + $0xf0] sm:$0xff] %vm1429_vm12, %v1804_v54  ;;  %1983 = vst [vmem:[%s3221_s10 + $0x120] sm:$0xff] (%p2537_p5), %v1982_v11 }
 0x2a2   : > { %v1806_v56 = vpop.permute.xlu1 %1805  ;;  %v1984_v14 = vld [vmem:[%s2686_s16 + $0xa8] sm:$0xff] (%p2537_p5) }
 0x2a3   : > { %2201 = vst.msk [vmem:[%s2686_s16 + $0xf8] sm:$0xff] %vm1429_vm12, %v1806_v56  ;;  %1985 = vst [vmem:[%s3221_s10 + $0x128] sm:$0xff] (%p2537_p5), %v1984_v14 }
 0x2a4   : > { %v1998_v26 = vld [vmem:[%s2686_s16 + $0xe0] sm:$0xff] }
 0x2a5   : > { %1999 = vst [vmem:[%s3221_s10 + $0x160] sm:$0xff] %v1998_v26 }
 0x2a6   : > { %v2000_v9 = vld [vmem:[%s2686_s16 + $0xe8] sm:$0xff] }
 0x2a7   : > { %2001 = vst [vmem:[%s3221_s10 + $0x168] sm:$0xff] %v2000_v9 }
 0x2a8   : > { %v2002_v18 = vld [vmem:[%s2686_s16 + $0xf0] sm:$0xff] }
 0x2a9   : > { %2003 = vst [vmem:[%s3221_s10 + $0x170] sm:$0xff] %v2002_v18 }
 0x2aa   : > { %v2004_v6 = vld [vmem:[%s2686_s16 + $0xf8] sm:$0xff] }
 0x2ab   : > { %2005 = vst [vmem:[%s3221_s10 + $0x178] sm:$0xff] %v2004_v6 }
 0x2ac PF: > { %s15_s23 = sadd.s32 1, %s2451_s23   ;;  %s3311_s17 = smov %s2431_s18 }
 0x2ad   : > { %p12_p12 = scmp.ge.s32.totalorder %s15_s23, 6   ;;  %s3312_s18 = smov %s2548_s5 }
 0x2ae   : > { %s3313_s19 = smov %s2443_s21  ;;  %s3314_s20 = smov %s2447_s22 }
 0x2af   : > { %s3315_s21 = smov %s3318_s3  ;;  %s3316_s22 = smov %s3322_s24 }
 0x2b0   :  { %14 = sbr.rel (!%p12_p12) target bundleno = 6 (0x6), region = 119 }

</bundles_post_ra>
